<compile_context>
chip_gen: v5e
topology: v5e:2x2
jax: 0.10.0
libtpu: 0.0.40
codegen_flags: <defaults>
</compile_context>

<pallas_src>
import functools

import jax
import jax.numpy as jnp
from jax.experimental import pallas as pl
from jax.experimental.pallas import tpu as pltpu


def transformer_encoder_kernel(
    # inputs
    x_ref, emb_w_ref, emb_b_ref,
    in_w_ref, out_w_ref, lin1_w_ref, lin2_w_ref, small_ref,
    head_w_ref, head_b_ref,
    # outputs
    z_ref,
    # scratch
    h_ref,
    *, nhead, latent_dim):
  layer = pl.program_id(1)
  B_blk, S, In = x_ref.shape
  D = emb_w_ref.shape[1]
  F = lin1_w_ref.shape[2]
  Dh = D // nhead
  N = B_blk * S
  eps = 1e-5
  inv_sqrt_dh = 1.0 / (Dh ** 0.5)

  def layer_norm(v, g, b):
    mu = jnp.mean(v, axis=-1, keepdims=True)
    c = v - mu
    var = jnp.mean(c * c, axis=-1, keepdims=True)
    return c * jax.lax.rsqrt(var + eps) * g + b

  # --- embedding: Linear(input_dim -> d_model), first layer step only ---
  @pl.when(layer == 0)
  def _():
    x2 = x_ref[...].reshape(N, In).astype(jnp.bfloat16)
    h_ref[...] = (jnp.dot(x2, emb_w_ref[...],
                          preferred_element_type=jnp.float32)
                  + emb_b_ref[...])

  h = h_ref[...]                                     # (N, D) f32

  # --- unpack this layer's parameters (one DMA for all the small tensors) ---
  sp = small_ref[...][0]                             # (8, P) f32
  qkv_b = sp[0:1, :3 * D]
  out_b = sp[1:2, :D]
  lin1_b = sp[2:3, :F]
  lin2_b = sp[3:4, :D]
  ln1_g = sp[4:5, :D]
  ln1_b = sp[5:6, :D]
  ln2_g = sp[6:7, :D]
  ln2_b = sp[7:8, :D]

  in_w = in_w_ref[...][0]                            # (D, 3D) bf16 (in_proj^T)
  out_w = out_w_ref[...][0]                          # (D, D)  bf16 (out_proj^T)
  lin1_w = lin1_w_ref[...][0]                        # (D, F)  bf16
  lin2_w = lin2_w_ref[...][0]                        # (F, D)  bf16

  # --- self attention (post-norm TransformerEncoderLayer, no dropout) ---
  h_bf = h.astype(jnp.bfloat16)
  qkv = (jnp.dot(h_bf, in_w, preferred_element_type=jnp.float32)
         + qkv_b)                                    # (N, 3D) fused q/k/v
  q = (qkv[:, 0 * D:1 * D] * inv_sqrt_dh).astype(jnp.bfloat16)  # scale folded into q
  k = qkv[:, 1 * D:2 * D].astype(jnp.bfloat16)
  v = qkv[:, 2 * D:3 * D].astype(jnp.bfloat16)

  ctxs = []
  for hd in range(nhead):
    qh = q[:, hd * Dh:(hd + 1) * Dh].reshape(B_blk, S, Dh)
    kh = k[:, hd * Dh:(hd + 1) * Dh].reshape(B_blk, S, Dh)
    vh = v[:, hd * Dh:(hd + 1) * Dh].reshape(B_blk, S, Dh)
    s = jnp.einsum('bqd,bkd->bqk', qh, kh,
                   preferred_element_type=jnp.float32)
    s = s - jnp.max(s, axis=-1, keepdims=True)
    p = jnp.exp(s)
    p = p * pl.reciprocal(jnp.sum(p, axis=-1, keepdims=True), approx=True)
    ctx = jnp.einsum('bqk,bkd->bqd', p.astype(jnp.bfloat16), vh,
                     preferred_element_type=jnp.float32)
    ctxs.append(ctx.reshape(N, Dh))
  # Single output projection with full K=D contraction (MXU-efficient).
  attn_ctx = jnp.concatenate(ctxs, axis=-1).astype(jnp.bfloat16)   # (N, D)
  attn = (jnp.dot(attn_ctx, out_w, preferred_element_type=jnp.float32)
          + out_b)

  h = layer_norm(h + attn, ln1_g, ln1_b)

  # --- feed-forward ---
  ff = (jnp.dot(h.astype(jnp.bfloat16), lin1_w,
                preferred_element_type=jnp.float32) + lin1_b)
  ff = jnp.maximum(ff, 0.0)
  ff = (jnp.dot(ff.astype(jnp.bfloat16), lin2_w,
                preferred_element_type=jnp.float32) + lin2_b)
  h = layer_norm(h + ff, ln2_g, ln2_b)

  h_ref[...] = h

  # --- fused latent heads on the last layer step ---
  @pl.when(layer == pl.num_programs(1) - 1)
  def _():
    last = h.reshape(B_blk, S, D)[:, S - 1, :]       # == transformer_out[-1]
    z = (jnp.dot(last.astype(jnp.bfloat16), head_w_ref[...],
                 preferred_element_type=jnp.float32)
         + head_b_ref[...])                          # (B_blk, 4*latent)
    ld = latent_dim
    col = jax.lax.broadcasted_iota(jnp.int32, z.shape, 1)
    is_scale = jnp.logical_and(col >= 2 * ld, col < 3 * ld)
    # exp() only on the scale columns; non-scale inputs are zeroed first so
    # the (discarded) exp lanes cannot overflow to inf.
    z_safe = jnp.where(is_scale, z, 0.0)
    z_ref[...] = jnp.where(is_scale, jnp.exp(z_safe), z)


def _vmem_limit_bytes():
  """Per-chip VMEM limit: ~3/4 of physical, capped, with a safe fallback."""
  try:
    info = pltpu.get_tpu_info()
    cap = getattr(info, "vmem_capacity_bytes", None)
    if cap:
      return int(min(cap * 3 // 4, 100 * 1024 * 1024))
  except Exception:
    pass
  return 48 * 1024 * 1024


def _choose_batch_block(B, S, In, D, F, budget_bytes, min_blocks=1):
  """Largest legal batch block whose f32 activation footprint fits the budget.

  Legal = divisor of B that is a multiple of 8 or equals B (output block
  second-minor constraint).  `min_blocks=2` keeps >=2 batch blocks so v7x's
  two TensorCores both get work.
  """
  def est(bb):
    n = bb * S
    return 4 * (n * D            # h scratch
                + 2 * bb * S * In  # x block (double-buffered)
                + n * 3 * D        # fused qkv (f32)
                + n * F            # FFN intermediate (f32)
                + 2 * bb * S * S   # score / prob tiles
                + 2 * n * D)       # attention / residual temporaries
  cap = max(1, B // max(1, min_blocks))
  best = None
  for c in range(1, B + 1):
    if B % c:
      continue
    if not (c % 8 == 0 or c == B):
      continue
    if c <= cap and est(c) <= budget_bytes:
      best = c
  if best is None:
    legal = [c for c in range(1, B + 1) if B % c == 0 and (c % 8 == 0 or c == B)]
    best = legal[0]
  return best


def transformer_encoder_forward(x, params, *, num_layers, nhead, latent_dim,
                                batch_block=None, min_batch_blocks=1):
  B, S, In = x.shape
  D = params['emb_w'].shape[1]
  F = params['lin1_w'].shape[2]
  P = params['small'].shape[2]
  L = num_layers

  vmem_limit = _vmem_limit_bytes()
  if batch_block is None:
    # Leave room for double-buffered streamed weights + resident head/emb.
    streamed = 2 * 2 * (D * 3 * D + D * D + D * F + F * D) + 2 * 4 * 8 * P
    resident = 2 * (In * D + D * 4 * latent_dim) + 4 * (D + 4 * latent_dim)
    budget = max(vmem_limit - streamed - resident - 8 * 1024 * 1024,
                 2 * 1024 * 1024)
    batch_block = _choose_batch_block(B, S, In, D, F, budget,
                                      min_blocks=min_batch_blocks)
  assert B % batch_block == 0
  nb = B // batch_block
  grid = (nb, L)

  inputs = [
      x,
      params['emb_w'], params['emb_b'],
      params['in_w'], params['out_w'], params['lin1_w'], params['lin2_w'],
      params['small'],
      params['head_w'], params['head_b'],
  ]

  in_specs = [
      pl.BlockSpec((batch_block, S, In), lambda b, l: (b, 0, 0)),        # x
      pl.BlockSpec((In, D), lambda b, l: (0, 0)),                        # emb_w
      pl.BlockSpec((1, D), lambda b, l: (0, 0)),                         # emb_b
      pl.BlockSpec((1, D, 3 * D), lambda b, l: (l, 0, 0)),               # in_w (fused qkv, streamed)
      pl.BlockSpec((1, D, D), lambda b, l: (l, 0, 0)),                   # out_w
      pl.BlockSpec((1, D, F), lambda b, l: (l, 0, 0)),                   # lin1_w
      pl.BlockSpec((1, F, D), lambda b, l: (l, 0, 0)),                   # lin2_w
      pl.BlockSpec((1, 8, P), lambda b, l: (l, 0, 0)),                   # packed biases / LN params
      pl.BlockSpec((D, 4 * latent_dim), lambda b, l: (0, 0)),            # head_w (fused heads)
      pl.BlockSpec((1, 4 * latent_dim), lambda b, l: (0, 0)),            # head_b
  ]
  out_spec = pl.BlockSpec((batch_block, 4 * latent_dim), lambda b, l: (b, 0))

  kernel = functools.partial(
      transformer_encoder_kernel, nhead=nhead, latent_dim=latent_dim)

  z_all = pl.pallas_call(
      kernel,
      out_shape=jax.ShapeDtypeStruct((B, 4 * latent_dim), jnp.float32),
      grid_spec=pltpu.PrefetchScalarGridSpec(
          num_scalar_prefetch=0,
          grid=grid,
          in_specs=in_specs,
          out_specs=out_spec,
          scratch_shapes=[pltpu.VMEM((batch_block * S, D), jnp.float32)]),
      compiler_params=pltpu.CompilerParams(
          dimension_semantics=("parallel", "arbitrary"),
          vmem_limit_bytes=vmem_limit),
  )(*inputs)

  Ld = latent_dim
  return (z_all[:, 0 * Ld:1 * Ld], z_all[:, 1 * Ld:2 * Ld],
          z_all[:, 2 * Ld:3 * Ld], z_all[:, 3 * Ld:4 * Ld])


def init_params(key, *, input_dim, d_model, num_layers, nhead, latent_dim,
                dim_feedforward=2048):
  # Deterministic synthetic initialization.  Matmul weights are stored
  # pre-transposed (in, out) and in bf16 for the MXU; biases / LN params stay
  # f32.  Mapping to PyTorch:
  #   in_w[l]   = in_proj_weight.T                      (D, 3D)
  #   out_w[l]  = out_proj.weight.T                     (D, D)
  #   small[l]  = rows [in_proj_bias, out_proj.bias, linear1.bias,
  #                     linear2.bias, norm1.weight, norm1.bias,
  #                     norm2.weight, norm2.bias], zero-padded to P lanes
  #   head_w    = concat([mean, logvar, scale, shape].weight.T, axis=1)
  keys = iter(jax.random.split(key, 32))

  def w(shape, dtype=jnp.bfloat16, scale=0.1):
    return (scale * jax.random.normal(next(keys), shape,
                                      dtype=jnp.float32)).astype(dtype)

  D, F, L = d_model, dim_feedforward, num_layers
  P = max(3 * D, F)
  p = {}
  p['emb_w'] = w((input_dim, D))
  p['emb_b'] = w((1, D), jnp.float32)
  p['in_w'] = w((L, D, 3 * D))
  p['out_w'] = w((L, D, D))
  p['lin1_w'] = w((L, D, F))
  p['lin2_w'] = w((L, F, D))
  p['head_w'] = w((D, 4 * latent_dim))
  p['head_b'] = w((1, 4 * latent_dim), jnp.float32)

  def pad_to(a, width):
    return jnp.pad(a, ((0, 0), (0, width - a.shape[-1])))

  qkv_b = w((L, 3 * D), jnp.float32)
  out_b = w((L, D), jnp.float32)
  lin1_b = w((L, F), jnp.float32)
  lin2_b = w((L, D), jnp.float32)
  ln1_g = jnp.ones((L, D), jnp.float32)
  ln1_b = jnp.zeros((L, D), jnp.float32)
  ln2_g = jnp.ones((L, D), jnp.float32)
  ln2_b = jnp.zeros((L, D), jnp.float32)
  p['small'] = jnp.stack(
      [pad_to(qkv_b, P), pad_to(out_b, P), pad_to(lin1_b, P), pad_to(lin2_b, P),
       pad_to(ln1_g, P), pad_to(ln1_b, P), pad_to(ln2_g, P), pad_to(ln2_b, P)],
      axis=1)                                        # (L, 8, P) f32
  return p


if __name__ == "__main__":
  # small shapes consistent with the module
  B, S = 2, 8
  input_dim, d_model, num_layers, nhead, latent_dim = 16, 32, 2, 4, 8

  key = jax.random.PRNGKey(0)
  k_x, k_p = jax.random.split(key)
  x = jax.random.normal(k_x, (B, S, input_dim), dtype=jnp.float32)
  params = init_params(k_p, input_dim=input_dim, d_model=d_model,
                       num_layers=num_layers, nhead=nhead,
                       latent_dim=latent_dim)

  z_mean, z_logvar, z_scale, z_shape = transformer_encoder_forward(
      x, params, num_layers=num_layers, nhead=nhead, latent_dim=latent_dim)
  jax.block_until_ready((z_mean, z_logvar, z_scale, z_shape))

  assert z_mean.shape == (B, latent_dim)
  assert z_logvar.shape == (B, latent_dim)
  assert z_scale.shape == (B, latent_dim)
  assert z_shape.shape == (B, latent_dim)
  assert bool(jnp.all(z_scale > 0))  # exp() head must be positive
  assert bool(jnp.all(jnp.isfinite(z_mean)))
  assert bool(jnp.all(jnp.isfinite(z_scale)))
  print("KERNEL_OK")
</pallas_src>

<mosaic_0001>
module attributes {stable_mosaic.version = 11 : i64} {
  func.func @transformer_encoder_kernel(%arg0: i32, %arg1: i32, %arg2: memref<2x8x16xf32, #tpu.memory_space<vmem>>, %arg3: memref<16x32xbf16, #tpu.memory_space<vmem>>, %arg4: memref<1x32xf32, #tpu.memory_space<vmem>>, %arg5: memref<1x32x96xbf16, #tpu.memory_space<vmem>>, %arg6: memref<1x32x32xbf16, #tpu.memory_space<vmem>>, %arg7: memref<1x32x2048xbf16, #tpu.memory_space<vmem>>, %arg8: memref<1x2048x32xbf16, #tpu.memory_space<vmem>>, %arg9: memref<1x8x2048xf32, #tpu.memory_space<vmem>>, %arg10: memref<32x32xbf16, #tpu.memory_space<vmem>>, %arg11: memref<1x32xf32, #tpu.memory_space<vmem>>, %arg12: memref<2x32xf32, #tpu.memory_space<vmem>>, %arg13: memref<16x32xf32, #tpu.memory_space<vmem>>) attributes {dimension_semantics = [#tpu.dimension_semantics<parallel>, #tpu.dimension_semantics<arbitrary>], iteration_bounds = array<i64: 1, 2>, scalar_prefetch = 0 : i64, scratch_operands = 1 : i64, tpu.core_type = #tpu.core_type<tc>, window_params = [{transform_indices = @transform_0, window_bounds = array<i64: 2, 8, 16>}, {pipeline_mode = #tpu.pipeline_mode<synchronous>, transform_indices = @transform_1, window_bounds = array<i64: 16, 32>}, {pipeline_mode = #tpu.pipeline_mode<synchronous>, transform_indices = @transform_2, window_bounds = array<i64: 1, 32>}, {transform_indices = @transform_3, window_bounds = array<i64: 1, 32, 96>}, {transform_indices = @transform_4, window_bounds = array<i64: 1, 32, 32>}, {transform_indices = @transform_5, window_bounds = array<i64: 1, 32, 2048>}, {transform_indices = @transform_6, window_bounds = array<i64: 1, 2048, 32>}, {transform_indices = @transform_7, window_bounds = array<i64: 1, 8, 2048>}, {pipeline_mode = #tpu.pipeline_mode<synchronous>, transform_indices = @transform_8, window_bounds = array<i64: 32, 32>}, {pipeline_mode = #tpu.pipeline_mode<synchronous>, transform_indices = @transform_9, window_bounds = array<i64: 1, 32>}, {transform_indices = @transform_10, window_bounds = array<i64: 2, 32>}]} {
    %c0_i32 = arith.constant 0 : i32
    %0 = arith.cmpi eq, %arg1, %c0_i32 : i32
    %1 = arith.extui %0 : i1 to i32
    %c0_i32_0 = arith.constant 0 : i32
    %2 = arith.cmpi ne, %1, %c0_i32_0 : i32
    scf.if %2 {
      %c0_51 = arith.constant 0 : index
      %c0_52 = arith.constant 0 : index
      %c0_53 = arith.constant 0 : index
      %175 = vector.load %arg2[%c0_51, %c0_52, %c0_53] : memref<2x8x16xf32, #tpu.memory_space<vmem>>, vector<2x8x16xf32>
      %176 = vector.shape_cast %175 : vector<2x8x16xf32> to vector<16x16xf32>
      %177 = arith.truncf %176 : vector<16x16xf32> to vector<16x16xbf16>
      %c0_54 = arith.constant 0 : index
      %c0_55 = arith.constant 0 : index
      %178 = vector.load %arg3[%c0_54, %c0_55] : memref<16x32xbf16, #tpu.memory_space<vmem>>, vector<16x32xbf16>
      %cst_56 = arith.constant dense<0.000000e+00> : vector<16x32xf32>
      %179 = tpu.matmul %177, %178, %cst_56 {dimension_numbers = #tpu.dot_dimension_numbers<[1], [0], [0], [1], [0, 0, 1, 1], [], []>} : vector<16x16xbf16>, vector<16x32xbf16>, vector<16x32xf32> -> vector<16x32xf32>
      %c0_57 = arith.constant 0 : index
      %c0_58 = arith.constant 0 : index
      %180 = vector.load %arg4[%c0_57, %c0_58] : memref<1x32xf32, #tpu.memory_space<vmem>>, vector<1x32xf32>
      %181 = vector.broadcast %180 : vector<1x32xf32> to vector<16x32xf32>
      %182 = arith.addf %179, %181 : vector<16x32xf32>
      %c0_59 = arith.constant 0 : index
      %c0_60 = arith.constant 0 : index
      %183 = vector.load %arg13[%c0_59, %c0_60] : memref<16x32xf32, #tpu.memory_space<vmem>>, vector<16x32xf32>
      tpu.vector_store %arg13[%c0_59, %c0_60], %182 {strides = array<i32>} : memref<16x32xf32, #tpu.memory_space<vmem>>, vector<16x32xf32>,
    } else {
    }
    %c0 = arith.constant 0 : index
    %c0_1 = arith.constant 0 : index
    %3 = vector.load %arg13[%c0, %c0_1] : memref<16x32xf32, #tpu.memory_space<vmem>>, vector<16x32xf32>
    %c0_2 = arith.constant 0 : index
    %c0_3 = arith.constant 0 : index
    %c0_4 = arith.constant 0 : index
    %4 = vector.load %arg9[%c0_2, %c0_3, %c0_4] : memref<1x8x2048xf32, #tpu.memory_space<vmem>>, vector<1x8x2048xf32>
    %5 = vector.shape_cast %4 : vector<1x8x2048xf32> to vector<8x2048xf32>
    %6 = vector.extract_strided_slice %5 {offsets = [0, 0], sizes = [1, 96], strides = [1, 1]} : vector<8x2048xf32> to vector<1x96xf32>
    %7 = vector.extract_strided_slice %5 {offsets = [1, 0], sizes = [1, 32], strides = [1, 1]} : vector<8x2048xf32> to vector<1x32xf32>
    %8 = vector.extract_strided_slice %5 {offsets = [2, 0], sizes = [1, 2048], strides = [1, 1]} : vector<8x2048xf32> to vector<1x2048xf32>
    %9 = vector.extract_strided_slice %5 {offsets = [3, 0], sizes = [1, 32], strides = [1, 1]} : vector<8x2048xf32> to vector<1x32xf32>
    %10 = vector.extract_strided_slice %5 {offsets = [4, 0], sizes = [1, 32], strides = [1, 1]} : vector<8x2048xf32> to vector<1x32xf32>
    %11 = vector.extract_strided_slice %5 {offsets = [5, 0], sizes = [1, 32], strides = [1, 1]} : vector<8x2048xf32> to vector<1x32xf32>
    %12 = vector.extract_strided_slice %5 {offsets = [6, 0], sizes = [1, 32], strides = [1, 1]} : vector<8x2048xf32> to vector<1x32xf32>
    %13 = vector.extract_strided_slice %5 {offsets = [7, 0], sizes = [1, 32], strides = [1, 1]} : vector<8x2048xf32> to vector<1x32xf32>
    %c0_5 = arith.constant 0 : index
    %c0_6 = arith.constant 0 : index
    %c0_7 = arith.constant 0 : index
    %14 = vector.load %arg5[%c0_5, %c0_6, %c0_7] : memref<1x32x96xbf16, #tpu.memory_space<vmem>>, vector<1x32x96xbf16>
    %15 = vector.shape_cast %14 : vector<1x32x96xbf16> to vector<32x96xbf16>
    %c0_8 = arith.constant 0 : index
    %c0_9 = arith.constant 0 : index
    %c0_10 = arith.constant 0 : index
    %16 = vector.load %arg6[%c0_8, %c0_9, %c0_10] : memref<1x32x32xbf16, #tpu.memory_space<vmem>>, vector<1x32x32xbf16>
    %17 = vector.shape_cast %16 : vector<1x32x32xbf16> to vector<32x32xbf16>
    %c0_11 = arith.constant 0 : index
    %c0_12 = arith.constant 0 : index
    %c0_13 = arith.constant 0 : index
    %18 = vector.load %arg7[%c0_11, %c0_12, %c0_13] : memref<1x32x2048xbf16, #tpu.memory_space<vmem>>, vector<1x32x2048xbf16>
    %19 = vector.shape_cast %18 : vector<1x32x2048xbf16> to vector<32x2048xbf16>
    %c0_14 = arith.constant 0 : index
    %c0_15 = arith.constant 0 : index
    %c0_16 = arith.constant 0 : index
    %20 = vector.load %arg8[%c0_14, %c0_15, %c0_16] : memref<1x2048x32xbf16, #tpu.memory_space<vmem>>, vector<1x2048x32xbf16>
    %21 = vector.shape_cast %20 : vector<1x2048x32xbf16> to vector<2048x32xbf16>
    %22 = arith.truncf %3 : vector<16x32xf32> to vector<16x32xbf16>
    %cst = arith.constant dense<0.000000e+00> : vector<16x96xf32>
    %23 = tpu.matmul %22, %15, %cst {dimension_numbers = #tpu.dot_dimension_numbers<[1], [0], [0], [1], [0, 0, 1, 1], [], []>} : vector<16x32xbf16>, vector<32x96xbf16>, vector<16x96xf32> -> vector<16x96xf32>
    %24 = vector.broadcast %6 : vector<1x96xf32> to vector<16x96xf32>
    %25 = arith.addf %23, %24 : vector<16x96xf32>
    %26 = vector.extract_strided_slice %25 {offsets = [0, 0], sizes = [16, 32], strides = [1, 1]} : vector<16x96xf32> to vector<16x32xf32>
    %cst_17 = arith.constant 0.353553385 : f32
    %27 = vector.broadcast %cst_17 : f32 to vector<16x32xf32>
    %28 = arith.mulf %26, %27 : vector<16x32xf32>
    %29 = arith.truncf %28 : vector<16x32xf32> to vector<16x32xbf16>
    %30 = vector.extract_strided_slice %25 {offsets = [0, 32], sizes = [16, 32], strides = [1, 1]} : vector<16x96xf32> to vector<16x32xf32>
    %31 = arith.truncf %30 : vector<16x32xf32> to vector<16x32xbf16>
    %32 = vector.extract_strided_slice %25 {offsets = [0, 64], sizes = [16, 32], strides = [1, 1]} : vector<16x96xf32> to vector<16x32xf32>
    %33 = arith.truncf %32 : vector<16x32xf32> to vector<16x32xbf16>
    %34 = vector.extract_strided_slice %29 {offsets = [0, 0], sizes = [16, 8], strides = [1, 1]} : vector<16x32xbf16> to vector<16x8xbf16>
    %35 = vector.shape_cast %34 : vector<16x8xbf16> to vector<2x8x8xbf16>
    %36 = vector.extract_strided_slice %31 {offsets = [0, 0], sizes = [16, 8], strides = [1, 1]} : vector<16x32xbf16> to vector<16x8xbf16>
    %37 = vector.shape_cast %36 : vector<16x8xbf16> to vector<2x8x8xbf16>
    %38 = vector.extract_strided_slice %33 {offsets = [0, 0], sizes = [16, 8], strides = [1, 1]} : vector<16x32xbf16> to vector<16x8xbf16>
    %39 = vector.shape_cast %38 : vector<16x8xbf16> to vector<2x8x8xbf16>
    "tpu.trace_start"() <{level = 10 : i32, message = "bqd,bkd->bqk"}> : () -> ()
    %cst_18 = arith.constant dense<0.000000e+00> : vector<2x8x8xf32>
    %40 = tpu.matmul %35, %37, %cst_18 {dimension_numbers = #tpu.dot_dimension_numbers<[2], [2], [1], [1], [0, 0, 0, 1, 1, 1], [0], [0]>} : vector<2x8x8xbf16>, vector<2x8x8xbf16>, vector<2x8x8xf32> -> vector<2x8x8xf32>
    "tpu.trace_stop"() : () -> ()
    %cst_19 = arith.constant dense<0xFF800000> : vector<2x8xf32>
    %41 = vector.multi_reduction <maximumf>, %40, %cst_19 [2] : vector<2x8x8xf32> to vector<2x8xf32>
    %42 = vector.shape_cast %41 : vector<2x8xf32> to vector<2x8x1xf32>
    %43 = vector.broadcast %42 : vector<2x8x1xf32> to vector<2x8x8xf32>
    %44 = arith.subf %40, %43 : vector<2x8x8xf32>
    %45 = math.exp %44 : vector<2x8x8xf32>
    %cst_20 = arith.constant dense<0.000000e+00> : vector<2x8xf32>
    %46 = vector.multi_reduction <add>, %45, %cst_20 [2] : vector<2x8x8xf32> to vector<2x8xf32>
    %47 = vector.shape_cast %46 : vector<2x8xf32> to vector<2x8x1xf32>
    %48 = tpu.reciprocal %47 {approx = true} : vector<2x8x1xf32> -> vector<2x8x1xf32>
    %49 = vector.broadcast %48 : vector<2x8x1xf32> to vector<2x8x8xf32>
    %50 = arith.mulf %45, %49 : vector<2x8x8xf32>
    %51 = arith.truncf %50 : vector<2x8x8xf32> to vector<2x8x8xbf16>
    "tpu.trace_start"() <{level = 10 : i32, message = "bqk,bkd->bqd"}> : () -> ()
    %cst_21 = arith.constant dense<0.000000e+00> : vector<2x8x8xf32>
    %52 = tpu.matmul %51, %39, %cst_21 {dimension_numbers = #tpu.dot_dimension_numbers<[2], [1], [1], [2], [0, 0, 0, 1, 1, 2], [0], [0]>} : vector<2x8x8xbf16>, vector<2x8x8xbf16>, vector<2x8x8xf32> -> vector<2x8x8xf32>
    "tpu.trace_stop"() : () -> ()
    %53 = vector.shape_cast %52 : vector<2x8x8xf32> to vector<16x8xf32>
    %54 = vector.extract_strided_slice %29 {offsets = [0, 8], sizes = [16, 8], strides = [1, 1]} : vector<16x32xbf16> to vector<16x8xbf16>
    %55 = vector.shape_cast %54 : vector<16x8xbf16> to vector<2x8x8xbf16>
    %56 = vector.extract_strided_slice %31 {offsets = [0, 8], sizes = [16, 8], strides = [1, 1]} : vector<16x32xbf16> to vector<16x8xbf16>
    %57 = vector.shape_cast %56 : vector<16x8xbf16> to vector<2x8x8xbf16>
    %58 = vector.extract_strided_slice %33 {offsets = [0, 8], sizes = [16, 8], strides = [1, 1]} : vector<16x32xbf16> to vector<16x8xbf16>
    %59 = vector.shape_cast %58 : vector<16x8xbf16> to vector<2x8x8xbf16>
    "tpu.trace_start"() <{level = 10 : i32, message = "bqd,bkd->bqk"}> : () -> ()
    %cst_22 = arith.constant dense<0.000000e+00> : vector<2x8x8xf32>
    %60 = tpu.matmul %55, %57, %cst_22 {dimension_numbers = #tpu.dot_dimension_numbers<[2], [2], [1], [1], [0, 0, 0, 1, 1, 1], [0], [0]>} : vector<2x8x8xbf16>, vector<2x8x8xbf16>, vector<2x8x8xf32> -> vector<2x8x8xf32>
    "tpu.trace_stop"() : () -> ()
    %cst_23 = arith.constant dense<0xFF800000> : vector<2x8xf32>
    %61 = vector.multi_reduction <maximumf>, %60, %cst_23 [2] : vector<2x8x8xf32> to vector<2x8xf32>
    %62 = vector.shape_cast %61 : vector<2x8xf32> to vector<2x8x1xf32>
    %63 = vector.broadcast %62 : vector<2x8x1xf32> to vector<2x8x8xf32>
    %64 = arith.subf %60, %63 : vector<2x8x8xf32>
    %65 = math.exp %64 : vector<2x8x8xf32>
    %cst_24 = arith.constant dense<0.000000e+00> : vector<2x8xf32>
    %66 = vector.multi_reduction <add>, %65, %cst_24 [2] : vector<2x8x8xf32> to vector<2x8xf32>
    %67 = vector.shape_cast %66 : vector<2x8xf32> to vector<2x8x1xf32>
    %68 = tpu.reciprocal %67 {approx = true} : vector<2x8x1xf32> -> vector<2x8x1xf32>
    %69 = vector.broadcast %68 : vector<2x8x1xf32> to vector<2x8x8xf32>
    %70 = arith.mulf %65, %69 : vector<2x8x8xf32>
    %71 = arith.truncf %70 : vector<2x8x8xf32> to vector<2x8x8xbf16>
    "tpu.trace_start"() <{level = 10 : i32, message = "bqk,bkd->bqd"}> : () -> ()
    %cst_25 = arith.constant dense<0.000000e+00> : vector<2x8x8xf32>
    %72 = tpu.matmul %71, %59, %cst_25 {dimension_numbers = #tpu.dot_dimension_numbers<[2], [1], [1], [2], [0, 0, 0, 1, 1, 2], [0], [0]>} : vector<2x8x8xbf16>, vector<2x8x8xbf16>, vector<2x8x8xf32> -> vector<2x8x8xf32>
    "tpu.trace_stop"() : () -> ()
    %73 = vector.shape_cast %72 : vector<2x8x8xf32> to vector<16x8xf32>
    %74 = vector.extract_strided_slice %29 {offsets = [0, 16], sizes = [16, 8], strides = [1, 1]} : vector<16x32xbf16> to vector<16x8xbf16>
    %75 = vector.shape_cast %74 : vector<16x8xbf16> to vector<2x8x8xbf16>
    %76 = vector.extract_strided_slice %31 {offsets = [0, 16], sizes = [16, 8], strides = [1, 1]} : vector<16x32xbf16> to vector<16x8xbf16>
    %77 = vector.shape_cast %76 : vector<16x8xbf16> to vector<2x8x8xbf16>
    %78 = vector.extract_strided_slice %33 {offsets = [0, 16], sizes = [16, 8], strides = [1, 1]} : vector<16x32xbf16> to vector<16x8xbf16>
    %79 = vector.shape_cast %78 : vector<16x8xbf16> to vector<2x8x8xbf16>
    "tpu.trace_start"() <{level = 10 : i32, message = "bqd,bkd->bqk"}> : () -> ()
    %cst_26 = arith.constant dense<0.000000e+00> : vector<2x8x8xf32>
    %80 = tpu.matmul %75, %77, %cst_26 {dimension_numbers = #tpu.dot_dimension_numbers<[2], [2], [1], [1], [0, 0, 0, 1, 1, 1], [0], [0]>} : vector<2x8x8xbf16>, vector<2x8x8xbf16>, vector<2x8x8xf32> -> vector<2x8x8xf32>
    "tpu.trace_stop"() : () -> ()
    %cst_27 = arith.constant dense<0xFF800000> : vector<2x8xf32>
    %81 = vector.multi_reduction <maximumf>, %80, %cst_27 [2] : vector<2x8x8xf32> to vector<2x8xf32>
    %82 = vector.shape_cast %81 : vector<2x8xf32> to vector<2x8x1xf32>
    %83 = vector.broadcast %82 : vector<2x8x1xf32> to vector<2x8x8xf32>
    %84 = arith.subf %80, %83 : vector<2x8x8xf32>
    %85 = math.exp %84 : vector<2x8x8xf32>
    %cst_28 = arith.constant dense<0.000000e+00> : vector<2x8xf32>
    %86 = vector.multi_reduction <add>, %85, %cst_28 [2] : vector<2x8x8xf32> to vector<2x8xf32>
    %87 = vector.shape_cast %86 : vector<2x8xf32> to vector<2x8x1xf32>
    %88 = tpu.reciprocal %87 {approx = true} : vector<2x8x1xf32> -> vector<2x8x1xf32>
    %89 = vector.broadcast %88 : vector<2x8x1xf32> to vector<2x8x8xf32>
    %90 = arith.mulf %85, %89 : vector<2x8x8xf32>
    %91 = arith.truncf %90 : vector<2x8x8xf32> to vector<2x8x8xbf16>
    "tpu.trace_start"() <{level = 10 : i32, message = "bqk,bkd->bqd"}> : () -> ()
    %cst_29 = arith.constant dense<0.000000e+00> : vector<2x8x8xf32>
    %92 = tpu.matmul %91, %79, %cst_29 {dimension_numbers = #tpu.dot_dimension_numbers<[2], [1], [1], [2], [0, 0, 0, 1, 1, 2], [0], [0]>} : vector<2x8x8xbf16>, vector<2x8x8xbf16>, vector<2x8x8xf32> -> vector<2x8x8xf32>
    "tpu.trace_stop"() : () -> ()
    %93 = vector.shape_cast %92 : vector<2x8x8xf32> to vector<16x8xf32>
    %94 = vector.extract_strided_slice %29 {offsets = [0, 24], sizes = [16, 8], strides = [1, 1]} : vector<16x32xbf16> to vector<16x8xbf16>
    %95 = vector.shape_cast %94 : vector<16x8xbf16> to vector<2x8x8xbf16>
    %96 = vector.extract_strided_slice %31 {offsets = [0, 24], sizes = [16, 8], strides = [1, 1]} : vector<16x32xbf16> to vector<16x8xbf16>
    %97 = vector.shape_cast %96 : vector<16x8xbf16> to vector<2x8x8xbf16>
    %98 = vector.extract_strided_slice %33 {offsets = [0, 24], sizes = [16, 8], strides = [1, 1]} : vector<16x32xbf16> to vector<16x8xbf16>
    %99 = vector.shape_cast %98 : vector<16x8xbf16> to vector<2x8x8xbf16>
    "tpu.trace_start"() <{level = 10 : i32, message = "bqd,bkd->bqk"}> : () -> ()
    %cst_30 = arith.constant dense<0.000000e+00> : vector<2x8x8xf32>
    %100 = tpu.matmul %95, %97, %cst_30 {dimension_numbers = #tpu.dot_dimension_numbers<[2], [2], [1], [1], [0, 0, 0, 1, 1, 1], [0], [0]>} : vector<2x8x8xbf16>, vector<2x8x8xbf16>, vector<2x8x8xf32> -> vector<2x8x8xf32>
    "tpu.trace_stop"() : () -> ()
    %cst_31 = arith.constant dense<0xFF800000> : vector<2x8xf32>
    %101 = vector.multi_reduction <maximumf>, %100, %cst_31 [2] : vector<2x8x8xf32> to vector<2x8xf32>
    %102 = vector.shape_cast %101 : vector<2x8xf32> to vector<2x8x1xf32>
    %103 = vector.broadcast %102 : vector<2x8x1xf32> to vector<2x8x8xf32>
    %104 = arith.subf %100, %103 : vector<2x8x8xf32>
    %105 = math.exp %104 : vector<2x8x8xf32>
    %cst_32 = arith.constant dense<0.000000e+00> : vector<2x8xf32>
    %106 = vector.multi_reduction <add>, %105, %cst_32 [2] : vector<2x8x8xf32> to vector<2x8xf32>
    %107 = vector.shape_cast %106 : vector<2x8xf32> to vector<2x8x1xf32>
    %108 = tpu.reciprocal %107 {approx = true} : vector<2x8x1xf32> -> vector<2x8x1xf32>
    %109 = vector.broadcast %108 : vector<2x8x1xf32> to vector<2x8x8xf32>
    %110 = arith.mulf %105, %109 : vector<2x8x8xf32>
    %111 = arith.truncf %110 : vector<2x8x8xf32> to vector<2x8x8xbf16>
    "tpu.trace_start"() <{level = 10 : i32, message = "bqk,bkd->bqd"}> : () -> ()
    %cst_33 = arith.constant dense<0.000000e+00> : vector<2x8x8xf32>
    %112 = tpu.matmul %111, %99, %cst_33 {dimension_numbers = #tpu.dot_dimension_numbers<[2], [1], [1], [2], [0, 0, 0, 1, 1, 2], [0], [0]>} : vector<2x8x8xbf16>, vector<2x8x8xbf16>, vector<2x8x8xf32> -> vector<2x8x8xf32>
    "tpu.trace_stop"() : () -> ()
    %113 = vector.shape_cast %112 : vector<2x8x8xf32> to vector<16x8xf32>
    %114 = tpu.concatenate %53, %73, %93, %113 in 1 : vector<16x8xf32>, vector<16x8xf32>, vector<16x8xf32>, vector<16x8xf32> -> vector<16x32xf32>
    %115 = arith.truncf %114 : vector<16x32xf32> to vector<16x32xbf16>
    %cst_34 = arith.constant dense<0.000000e+00> : vector<16x32xf32>
    %116 = tpu.matmul %115, %17, %cst_34 {dimension_numbers = #tpu.dot_dimension_numbers<[1], [0], [0], [1], [0, 0, 1, 1], [], []>} : vector<16x32xbf16>, vector<32x32xbf16>, vector<16x32xf32> -> vector<16x32xf32>
    %117 = vector.broadcast %7 : vector<1x32xf32> to vector<16x32xf32>
    %118 = arith.addf %116, %117 : vector<16x32xf32>
    %119 = arith.addf %3, %118 : vector<16x32xf32>
    %cst_35 = arith.constant dense<0.000000e+00> : vector<16xf32>
    %120 = vector.multi_reduction <add>, %119, %cst_35 [1] : vector<16x32xf32> to vector<16xf32>
    %121 = vector.shape_cast %120 : vector<16xf32> to vector<16x1xf32>
    %cst_36 = arith.constant 3.200000e+01 : f32
    %122 = vector.broadcast %cst_36 : f32 to vector<16x1xf32>
    %123 = arith.divf %121, %122 : vector<16x1xf32>
    %124 = vector.broadcast %123 : vector<16x1xf32> to vector<16x32xf32>
    %125 = arith.subf %119, %124 : vector<16x32xf32>
    %126 = arith.mulf %125, %125 : vector<16x32xf32>
    %cst_37 = arith.constant dense<0.000000e+00> : vector<16xf32>
    %127 = vector.multi_reduction <add>, %126, %cst_37 [1] : vector<16x32xf32> to vector<16xf32>
    %128 = vector.shape_cast %127 : vector<16xf32> to vector<16x1xf32>
    %cst_38 = arith.constant 3.200000e+01 : f32
    %129 = vector.broadcast %cst_38 : f32 to vector<16x1xf32>
    %130 = arith.divf %128, %129 : vector<16x1xf32>
    %cst_39 = arith.constant 9.99999974E-6 : f32
    %131 = vector.broadcast %cst_39 : f32 to vector<16x1xf32>
    %132 = arith.addf %130, %131 : vector<16x1xf32>
    %133 = math.rsqrt %132 : vector<16x1xf32>
    %134 = vector.broadcast %133 : vector<16x1xf32> to vector<16x32xf32>
    %135 = arith.mulf %125, %134 : vector<16x32xf32>
    %136 = vector.broadcast %10 : vector<1x32xf32> to vector<16x32xf32>
    %137 = arith.mulf %135, %136 : vector<16x32xf32>
    %138 = vector.broadcast %11 : vector<1x32xf32> to vector<16x32xf32>
    %139 = arith.addf %137, %138 : vector<16x32xf32>
    %140 = arith.truncf %139 : vector<16x32xf32> to vector<16x32xbf16>
    %cst_40 = arith.constant dense<0.000000e+00> : vector<16x2048xf32>
    %141 = tpu.matmul %140, %19, %cst_40 {dimension_numbers = #tpu.dot_dimension_numbers<[1], [0], [0], [1], [0, 0, 1, 1], [], []>} : vector<16x32xbf16>, vector<32x2048xbf16>, vector<16x2048xf32> -> vector<16x2048xf32>
    %142 = vector.broadcast %8 : vector<1x2048xf32> to vector<16x2048xf32>
    %143 = arith.addf %141, %142 : vector<16x2048xf32>
    %cst_41 = arith.constant 0.000000e+00 : f32
    %144 = vector.broadcast %cst_41 : f32 to vector<16x2048xf32>
    %145 = arith.maximumf %143, %144 : vector<16x2048xf32>
    %146 = arith.truncf %145 : vector<16x2048xf32> to vector<16x2048xbf16>
    %cst_42 = arith.constant dense<0.000000e+00> : vector<16x32xf32>
    %147 = tpu.matmul %146, %21, %cst_42 {dimension_numbers = #tpu.dot_dimension_numbers<[1], [0], [0], [1], [0, 0, 1, 1], [], []>} : vector<16x2048xbf16>, vector<2048x32xbf16>, vector<16x32xf32> -> vector<16x32xf32>
    %148 = vector.broadcast %9 : vector<1x32xf32> to vector<16x32xf32>
    %149 = arith.addf %147, %148 : vector<16x32xf32>
    %150 = arith.addf %139, %149 : vector<16x32xf32>
    %cst_43 = arith.constant dense<0.000000e+00> : vector<16xf32>
    %151 = vector.multi_reduction <add>, %150, %cst_43 [1] : vector<16x32xf32> to vector<16xf32>
    %152 = vector.shape_cast %151 : vector<16xf32> to vector<16x1xf32>
    %cst_44 = arith.constant 3.200000e+01 : f32
    %153 = vector.broadcast %cst_44 : f32 to vector<16x1xf32>
    %154 = arith.divf %152, %153 : vector<16x1xf32>
    %155 = vector.broadcast %154 : vector<16x1xf32> to vector<16x32xf32>
    %156 = arith.subf %150, %155 : vector<16x32xf32>
    %157 = arith.mulf %156, %156 : vector<16x32xf32>
    %cst_45 = arith.constant dense<0.000000e+00> : vector<16xf32>
    %158 = vector.multi_reduction <add>, %157, %cst_45 [1] : vector<16x32xf32> to vector<16xf32>
    %159 = vector.shape_cast %158 : vector<16xf32> to vector<16x1xf32>
    %cst_46 = arith.constant 3.200000e+01 : f32
    %160 = vector.broadcast %cst_46 : f32 to vector<16x1xf32>
    %161 = arith.divf %159, %160 : vector<16x1xf32>
    %cst_47 = arith.constant 9.99999974E-6 : f32
    %162 = vector.broadcast %cst_47 : f32 to vector<16x1xf32>
    %163 = arith.addf %161, %162 : vector<16x1xf32>
    %164 = math.rsqrt %163 : vector<16x1xf32>
    %165 = vector.broadcast %164 : vector<16x1xf32> to vector<16x32xf32>
    %166 = arith.mulf %156, %165 : vector<16x32xf32>
    %167 = vector.broadcast %12 : vector<1x32xf32> to vector<16x32xf32>
    %168 = arith.mulf %166, %167 : vector<16x32xf32>
    %169 = vector.broadcast %13 : vector<1x32xf32> to vector<16x32xf32>
    %170 = arith.addf %168, %169 : vector<16x32xf32>
    %c0_48 = arith.constant 0 : index
    %c0_49 = arith.constant 0 : index
    %171 = vector.load %arg13[%c0_48, %c0_49] : memref<16x32xf32, #tpu.memory_space<vmem>>, vector<16x32xf32>
    tpu.vector_store %arg13[%c0_48, %c0_49], %170 {strides = array<i32>} : memref<16x32xf32, #tpu.memory_space<vmem>>, vector<16x32xf32>,
    %c1_i32 = arith.constant 1 : i32
    %172 = arith.cmpi eq, %arg1, %c1_i32 : i32
    %173 = arith.extui %172 : i1 to i32
    %c0_i32_50 = arith.constant 0 : i32
    %174 = arith.cmpi ne, %173, %c0_i32_50 : i32
    scf.if %174 {
      %175 = vector.shape_cast %170 : vector<16x32xf32> to vector<2x8x32xf32>
      %176 = vector.extract_strided_slice %175 {offsets = [0, 7, 0], sizes = [2, 1, 32], strides = [1, 1, 1]} : vector<2x8x32xf32> to vector<2x1x32xf32>
      %177 = vector.shape_cast %176 : vector<2x1x32xf32> to vector<2x32xf32>
      %178 = arith.truncf %177 : vector<2x32xf32> to vector<2x32xbf16>
      %c0_51 = arith.constant 0 : index
      %c0_52 = arith.constant 0 : index
      %179 = vector.load %arg10[%c0_51, %c0_52] : memref<32x32xbf16, #tpu.memory_space<vmem>>, vector<32x32xbf16>
      %cst_53 = arith.constant dense<0.000000e+00> : vector<2x32xf32>
      %180 = tpu.matmul %178, %179, %cst_53 {dimension_numbers = #tpu.dot_dimension_numbers<[1], [0], [0], [1], [0, 0, 1, 1], [], []>} : vector<2x32xbf16>, vector<32x32xbf16>, vector<2x32xf32> -> vector<2x32xf32>
      %c0_54 = arith.constant 0 : index
      %c0_55 = arith.constant 0 : index
      %181 = vector.load %arg11[%c0_54, %c0_55] : memref<1x32xf32, #tpu.memory_space<vmem>>, vector<1x32xf32>
      %182 = vector.broadcast %181 : vector<1x32xf32> to vector<2x32xf32>
      %183 = arith.addf %180, %182 : vector<2x32xf32>
      %184 = tpu.iota {dimensions = array<i32: 1>} : vector<2x32xi32>
      %c16_i32 = arith.constant 16 : i32
      %185 = vector.broadcast %c16_i32 : i32 to vector<2x32xi32>
      %186 = arith.cmpi sge, %184, %185 : vector<2x32xi32>
      %c24_i32 = arith.constant 24 : i32
      %187 = vector.broadcast %c24_i32 : i32 to vector<2x32xi32>
      %188 = arith.cmpi slt, %184, %187 : vector<2x32xi32>
      %189 = arith.andi %186, %188 : vector<2x32xi1>
      %cst_56 = arith.constant 0.000000e+00 : f32
      %190 = vector.broadcast %cst_56 : f32 to vector<2x32xf32>
      %191 = arith.select %189, %183, %190 : vector<2x32xi1>, vector<2x32xf32>
      %192 = math.exp %191 : vector<2x32xf32>
      %193 = arith.select %189, %192, %183 : vector<2x32xi1>, vector<2x32xf32>
      %c0_57 = arith.constant 0 : index
      %c0_58 = arith.constant 0 : index
      %194 = vector.load %arg12[%c0_57, %c0_58] : memref<2x32xf32, #tpu.memory_space<vmem>>, vector<2x32xf32>
      tpu.vector_store %arg12[%c0_57, %c0_58], %193 {strides = array<i32>} : memref<2x32xf32, #tpu.memory_space<vmem>>, vector<2x32xf32>,
    } else {
    }
    return
  }
  func.func @transform_0(%arg0: i32, %arg1: i32) -> (i32, i32, i32) {
    %c0_i32 = arith.constant 0 : i32
    %c0_i32_0 = arith.constant 0 : i32
    %c0_i32_1 = arith.constant 0 : i32
    return %arg0, %c0_i32, %c0_i32_0 : i32, i32, i32
  }
  func.func @transform_1(%arg0: i32, %arg1: i32) -> (i32, i32) {
    %c0_i32 = arith.constant 0 : i32
    %c0_i32_0 = arith.constant 0 : i32
    %c0_i32_1 = arith.constant 0 : i32
    return %c0_i32, %c0_i32_0 : i32, i32
  }
  func.func @transform_2(%arg0: i32, %arg1: i32) -> (i32, i32) {
    %c0_i32 = arith.constant 0 : i32
    %c0_i32_0 = arith.constant 0 : i32
    %c0_i32_1 = arith.constant 0 : i32
    return %c0_i32, %c0_i32_0 : i32, i32
  }
  func.func @transform_3(%arg0: i32, %arg1: i32) -> (i32, i32, i32) {
    %c0_i32 = arith.constant 0 : i32
    %c0_i32_0 = arith.constant 0 : i32
    %c0_i32_1 = arith.constant 0 : i32
    return %arg1, %c0_i32, %c0_i32_0 : i32, i32, i32
  }
  func.func @transform_4(%arg0: i32, %arg1: i32) -> (i32, i32, i32) {
    %c0_i32 = arith.constant 0 : i32
    %c0_i32_0 = arith.constant 0 : i32
    %c0_i32_1 = arith.constant 0 : i32
    return %arg1, %c0_i32, %c0_i32_0 : i32, i32, i32
  }
  func.func @transform_5(%arg0: i32, %arg1: i32) -> (i32, i32, i32) {
    %c0_i32 = arith.constant 0 : i32
    %c0_i32_0 = arith.constant 0 : i32
    %c0_i32_1 = arith.constant 0 : i32
    return %arg1, %c0_i32, %c0_i32_0 : i32, i32, i32
  }
  func.func @transform_6(%arg0: i32, %arg1: i32) -> (i32, i32, i32) {
    %c0_i32 = arith.constant 0 : i32
    %c0_i32_0 = arith.constant 0 : i32
    %c0_i32_1 = arith.constant 0 : i32
    return %arg1, %c0_i32, %c0_i32_0 : i32, i32, i32
  }
  func.func @transform_7(%arg0: i32, %arg1: i32) -> (i32, i32, i32) {
    %c0_i32 = arith.constant 0 : i32
    %c0_i32_0 = arith.constant 0 : i32
    %c0_i32_1 = arith.constant 0 : i32
    return %arg1, %c0_i32, %c0_i32_0 : i32, i32, i32
  }
  func.func @transform_8(%arg0: i32, %arg1: i32) -> (i32, i32) {
    %c0_i32 = arith.constant 0 : i32
    %c0_i32_0 = arith.constant 0 : i32
    %c0_i32_1 = arith.constant 0 : i32
    return %c0_i32, %c0_i32_0 : i32, i32
  }
  func.func @transform_9(%arg0: i32, %arg1: i32) -> (i32, i32) {
    %c0_i32 = arith.constant 0 : i32
    %c0_i32_0 = arith.constant 0 : i32
    %c0_i32_1 = arith.constant 0 : i32
    return %c0_i32, %c0_i32_0 : i32, i32
  }
  func.func @transform_10(%arg0: i32, %arg1: i32) -> (i32, i32) {
    %c0_i32 = arith.constant 0 : i32
    %c0_i32_0 = arith.constant 0 : i32
    return %arg0, %c0_i32 : i32, i32
  }
}

</mosaic_0001>

<bundles_post_ra>
// kernel: tpu_custom_call.1
= control target key start
LH: loop header
LB: loop body
LE: loop exit
PB: predicated region body
PF: predicated region fallthrough
CT: control target
= control target key end

     0   :  { %15 = vsyncpa [#allocation4], 0  ;;  %s4255_s13 = smov 0   ;;  %s4257_s14 = smov 0   ;;  %s4751_s0 = inlined_call_operand.vmem [shape: f32[2,8,16], index: 0, kind: input, shape index: {}]   ;;  %s4752_s1 = inlined_call_operand.vmem [shape: bf16[16,32], index: 1, kind: input, shape index: {}]   ;;  %s4753_s2 = inlined_call_operand.vmem [shape: f32[1,32], index: 2, kind: input, shape index: {}]   ;;  %s4754_s3 = inlined_call_operand.vmem [shape: bf16[2,32,96], index: 3, kind: input, shape index: {}]   ;;  %s4755_s4 = inlined_call_operand.vmem [shape: bf16[2,32,32], index: 4, kind: input, shape index: {}]   ;;  %s4756_s5 = inlined_call_operand.vmem [shape: bf16[2,32,2048], index: 5, kind: input, shape index: {}]   ;;  %s4757_s6 = inlined_call_operand.vmem [shape: bf16[2,2048,32], index: 6, kind: input, shape index: {}]   ;;  %s4758_s7 = inlined_call_operand.vmem [shape: f32[2,8,2048], index: 7, kind: input, shape index: {}]   ;;  %s4759_s8 = inlined_call_operand.vmem [shape: bf16[32,32], index: 8, kind: input, shape index: {}]   ;;  %s4760_s9 = inlined_call_operand.vmem [shape: f32[1,32], index: 9, kind: input, shape index: {}]   ;;  %s4761_s10 = inlined_call_operand.hbm [shape: f32[2,32], index: 10, kind: output, shape index: {}]  }
   0x1   :  { %s4259_s15 = smov 0  }
   0x2 LB: > { %4763 = sst [smem:[#allocation6_spill]] %s4178_s14  ;;  %s30_s17 = sadd.s32 1, %s4178_s14  ;;  %s4182_s15 = sphi %s4259_s15, %s21_s15   ;;  %s4178_s14 = sphi %s4257_s14, %s4767_s14   ;;  %s4174_s13 = sphi %s4255_s13, %s4766_s13  }
   0x3   : > { %p31_p0 = scmp.ge.s32.totalorder %s30_s17, 2  ;;  %p3127_p1 = scmp.ge.s32.totalorder %s4182_s15, 1 }
   0x4   : > { %p376_p2 = scmp.lt.s32.totalorder %s4182_s15, 3 }
   0x5   : > { %s4769_s17 = smov (%p31_p0, %s30_s17), 0 }
   0x6   : > { %4764 = sst [smem:[#allocation7_spill]] %s4769_s17  ;;  %p377_p3 = pnand %p3127_p1, %p376_p2 }
   0x7   : > { %p440_p4 = scmp.lt.s32.totalorder (!%p377_p3), %s4174_s13, 1  ;;  %p3138_p5 = scmp.ne.s32.totalorder (!%p377_p3), %s4174_s13, 0 }
   0x8   : > { %380 = sbr.rel (%p377_p3) target bundleno = 2355 (0x933), region = 60 }
   0xd   : > { %s441_s18 = scalar_select %p440_p4, %s4174_s13, 1 }
   0xf   : > { %s3848_s19 = sshll.u32 %s441_s18, 4  ;;  %s3850_s20 = sshll.u32 %s441_s18, 8 }
  0x10   : > { %s444_s23 = scalar_lea.vmem %s4754_s3, %s3848_s19  ;;  %s4284_s26 = scalar_lea.vmem %s4755_s4, %s3848_s19 }
  0x11   : > { %s4289_s29 = scalar_lea.vmem %s4756_s5, %s3850_s20  ;;  %s3851_s30 = sshll.u32 %s441_s18, 10 }
  0x12   : > { %s4294_s16 = scalar_lea.vmem %s4757_s6, %s3851_s30  ;;  %s3852_s17 = sshll.u32 %s441_s18, 7 }
  0x13   : > { %s4299_s22 = scalar_lea.vmem %s4758_s7, %s3852_s17  ;;  %469 = sbr.rel (%p3138_p5) target bundleno = 165 (0xa5), region = 64 }
  0x18   : > { %v3853_v0 = vld [vmem:[%s4752_s1] sm:$0xff]  ;;  %v471_v2 = vld [vmem:[%s4751_s0 + $0x8] sm:$0xff]  ;;  %vm485_vm0 = vcmask 130048   ;;  %vm503_vm1 = vcmask 261120  }
  0x19   : > { %v470_v1 = vld [vmem:[%s4751_s0] sm:$0xff]  ;;  %496 = vmatpush.bf16.msra.mxu0 %v3853_v0 }
  0x1a   : > { %v472_v3 = vpack.c.bf16 %v471_v2, %v470_v1  ;;  %v4066_v4 = vld [vmem:[%s4753_s2] ss:$0 sm:$0xff] }
  0x1c   : > { %3143 = vmatmul.msk.bf16.vlgmr.msra.gmra.mxu0 %vm485_vm0, %v472_v3 }
  0x99   : > { %v498_v5 = vpop.f32.mrf.mxu0 }
  0x9a   : > { %v499_v6 = vadd.f32 %v4066_v4, %v498_v5 }
  0x9c   : > { %504 = vst.msk [vmem:[#allocation2] sm:$0xff] %vm503_vm1, %v499_v6 }
  0xa1   : > { %v500_v7 = vpop.f32.mrf.mxu0 }
  0xa2   : > { %v501_v8 = vadd.f32 %v4066_v4, %v500_v7 }
  0xa4   : > { %505 = vst.msk [vmem:[#allocation2 + $0x8] sm:$0xff] %vm503_vm1, %v501_v8 }
  0xa5 PF: > { %v3855_v9 = vld [vmem:[%s444_s23 + $0x8] sm:$0xff]  ;;  %v3854_v10 = vld [vmem:[%s444_s23] sm:$0xff]  ;;  %vm834_vm2 = vcmask 261120   ;;  %s4184_s18 = smov 88   ;;  %s4185_s23 = smov 96   ;;  %vm863_vm3 = vcmask 64512  }
  0xa6   : > { %844 = vmatpush.bf16.msra.mxu0 %v3855_v9  ;;  %v4314_v11 = vld [vmem:[#allocation2] sm:$0xff]  ;;  %s4186_s30 = smov 120   ;;  %s4187_s11 = smov 80   ;;  %vm936_vm4 = vcmask 1043456   ;;  %vm1342_vm5 = vcmask 130048   ;;  %vm1345_vm6 = vcmask 195584  }
  0xa7   : > { %v4322_v14 = vld [vmem:[%s4299_s22] sm:$0xff]  ;;  %s4188_s12 = smov 112   ;;  %s4189_s21 = smov 72  }
  0xa8   : > { %v821_v15 = vperm.slane %v4322_v14, 0  ;;  %s4190_s19 = smov 104   ;;  %s4191_s24 = smov 64  }
  0xa9   : > { %s4192_s20 = smov 56   ;;  %s4193_s25 = smov 48  }
  0xaa   : > { %845 = vmatpush.bf16.msra.mxu0 %v3854_v10  ;;  %s4194_s27 = smov 40   ;;  %s4195_s28 = smov 8  }
  0xab   : > { %v4316_v12 = vld [vmem:[#allocation2 + $0x8] sm:$0xff]  ;;  %s4196_s14 = smov 16   ;;  %s4197_s17 = smov 24  }
  0xac   : > { %v820_v13 = vpack.c.bf16 %v4316_v12, %v4314_v11  ;;  %p3834_p6 = scmp.ne.s32.totalorder %s4174_s13, 1 }
  0xae   : > { %3152 = vmatmul.msk.bf16.vlgmr.msra.gmra.mxu0 %vm834_vm2, %v820_v13 }
 0x12b   : > { %v847_v16 = vpop.f32.mrf.mxu0 }
 0x12c   : > { %v848_v17 = vadd.f32 %v847_v16, %v821_v15 }
 0x12e   : > { %v852_v18 = vmul.f32 0.35355338, %v848_v17  ;;  %v856_v19 = vpack.c.bf16 %v848_v17, %v848_v17 }
 0x130   : > { %v854_v20 = vpack.c.bf16 %v852_v18, %v852_v18  ;;  %v859_v21 = vunpack.c.l.b16 %v856_v19 }
 0x132   : > { %v4325_v22 = vpack.c.b16 %v859_v21, %v859_v21  ;;  %v975_v23 = vunpack.c.l.b16 %v854_v20 }
 0x133   : > { %v849_v24 = vpop.f32.mrf.mxu0 }
 0x134   : > { %v850_v25 = vadd.f32 %v849_v24, %v821_v15  ;;  %979 = vrot.lane.b32.xlu1 %v4325_v22, %s4184_s18  ;;  %861 = vrot.lane.b32.xlu0 %v4325_v22, %s4185_s23  ;;  %v976_v26 = vpack.c.b16 %v975_v23, %v975_v23 }
 0x136   : > { %v853_v27 = vmul.f32 0.35355338, %v850_v25  ;;  %v857_v28 = vpack.c.bf16 %v850_v25, %v850_v25  ;;  %977 = vrot.lane.b32.xlu2 %v976_v26, %s4186_s30 }
 0x138   : > { %v855_v29 = vpack.c.bf16 %v853_v27, %v853_v27  ;;  %v884_v30 = vunpack.c.l.b16 %v857_v28 }
 0x13a   : > { %v4329_v31 = vpack.c.b16 %v884_v30, %v884_v30  ;;  %v1001_v32 = vunpack.c.l.b16 %v855_v29 }
 0x13c   : > { %1005 = vrot.lane.b32.xlu1 %v4329_v31, %s4184_s18  ;;  %886 = vrot.lane.b32.xlu0 %v4329_v31, %s4185_s23  ;;  %v1002_v33 = vpack.c.b16 %v1001_v32, %v1001_v32 }
 0x13e   : > { %1003 = vrot.lane.b32.xlu2 %v1002_v33, %s4186_s30 }
 0x144   : > { %1117 = vrot.lane.b32.xlu1 %v4329_v31, %s4187_s11  ;;  %1094 = vrot.lane.b32.xlu0 %v4325_v22, %s4187_s11 }
 0x146   : > { %1092 = vrot.lane.b32.xlu2 %v976_v26, %s4188_s12 }
 0x14c   : > { %1206 = vrot.lane.b32.xlu1 %v4325_v22, %s4189_s21  ;;  %1115 = vrot.lane.b32.xlu0 %v1002_v33, %s4188_s12 }
 0x14e   : > { %1229 = vrot.lane.b32.xlu2 %v4329_v31, %s4189_s21 }
 0x154   : > { %1227 = vrot.lane.b32.xlu1 %v1002_v33, %s4190_s19  ;;  %1204 = vrot.lane.b32.xlu0 %v976_v26, %s4190_s19 }
 0x190   : > { %v978_v34 = vpop.permute.xlu2 %977 }
 0x198   : > { %v1004_v39 = vpop.permute.xlu2 %1003 }
 0x1a0   : > { %v1093_v44 = vpop.permute.xlu2 %1092 }
 0x1a6   : > { %v980_v35 = vpop.permute.xlu1 %979  ;;  %v862_v36 = vpop.permute.xlu0 %861 }
 0x1a7   : > { %v868_v37 = vsel %vm863_vm3, %v862_v36, 0  ;;  %v985_v38 = vsel %vm863_vm3, %v980_v35, 0 }
 0x1a8   : > { %877 = vmatpush.bf16.xpose.msra.mxu1 %v868_v37  ;;  %994 = vmatpush.bf16.xpose.msrb.mxu0 %v985_v38  ;;  %v1230_v49 = vpop.permute.xlu2 %1229 }
 0x1a9   : > { %v1235_v51 = vsel %vm863_vm3, %v1230_v49, 0 }
 0x1ae   : > { %v1006_v40 = vpop.permute.xlu1 %1005  ;;  %v887_v41 = vpop.permute.xlu0 %886 }
 0x1af   : > { %3153 = vmatmul.msk.bf16.vlgmr.msra.gmra.mxu1 %vm863_vm3, %v854_v20  ;;  %3157 = vmatmul.msk.bf16.vlgmr.msrb.gmra.mxu0 %vm863_vm3, %v978_v34  ;;  %v892_v42 = vsel %vm863_vm3, %v887_v41, 0  ;;  %v1011_v43 = vsel %vm863_vm3, %v1006_v40, 0 }
 0x1b0   : > { %901 = vmatpush.bf16.xpose.msra.mxu2 %v892_v42  ;;  %1020 = vmatpush.bf16.xpose.msrb.mxu1 %v1011_v43 }
 0x1b6   : > { %v1118_v45 = vpop.permute.xlu1 %1117  ;;  %v1095_v46 = vpop.permute.xlu0 %1094 }
 0x1b7   : > { %v1123_v47 = vsel %vm863_vm3, %v1118_v45, 0  ;;  %v1100_v48 = vsel %vm863_vm3, %v1095_v46, 0  ;;  %3154 = vmatmul.msk.bf16.vlgmr.msra.gmra.mxu2 %vm863_vm3, %v855_v29 }
 0x1b8   : > { %1109 = vmatpush.bf16.xpose.msra.mxu0 %v1100_v48  ;;  %1132 = vmatpush.bf16.xpose.msra.mxu1 %v1123_v47 }
 0x1be   : > { %v1207_v50 = vpop.permute.xlu1 %1206  ;;  %v1116_v53 = vpop.permute.xlu0 %1115 }
 0x1bf   : > { %v1212_v52 = vsel %vm863_vm3, %v1207_v50, 0  ;;  %3158 = vmatmul.msk.bf16.vlgmr.msrb.gmra.mxu1 %vm863_vm3, %v1004_v39  ;;  %3161 = vmatmul.msk.bf16.vlgmr.msra.gmra.mxu0 %vm863_vm3, %v1093_v44 }
 0x1c0   : > { %1244 = vmatpush.bf16.xpose.msrb.mxu1 %v1235_v51  ;;  %1221 = vmatpush.bf16.xpose.msrb.mxu0 %v1212_v52 }
 0x1c6   : > { %v1205_v54 = vpop.permute.xlu0 %1204  ;;  %v1228_v55 = vpop.permute.xlu1 %1227 }
 0x1cf   : > { %3162 = vmatmul.msk.bf16.vlgmr.msra.gmra.mxu1 %vm863_vm3, %v1116_v53  ;;  %3165 = vmatmul.msk.bf16.vlgmr.msrb.gmra.mxu0 %vm863_vm3, %v1205_v54 }
 0x1df   : > { %3166 = vmatmul.msk.bf16.vlgmr.msrb.gmra.mxu1 %vm863_vm3, %v1228_v55 }
 0x22c   : > { %v879_v56 = vpop.f32.mrf.mxu1  ;;  %v996_v57 = vpop.f32.mrf.mxu0 }
 0x22d   : > { %v1026_v58 = vsel %vm863_vm3, %v996_v57, -inf  ;;  %v907_v59 = vsel %vm863_vm3, %v879_v56, -inf }
 0x22e   : > { %1027 = vmax.xlane.f32.xlu1 %v1026_v58  ;;  %908 = vmax.xlane.f32.xlu2 %v907_v59 }
 0x234   : > { %v881_v60 = vpop.f32.mrf.mxu1  ;;  %v998_v61 = vpop.f32.mrf.mxu0 }
 0x23a   : > { %v903_v62 = vpop.f32.mrf.mxu2 }
 0x23b   : > { %v910_v63 = vsel %vm863_vm3, %v903_v62, -inf }
 0x23c   : > { %911 = vmax.xlane.f32.xlu0 %v910_v63  ;;  %v1022_v0 = vpop.f32.mrf.mxu1  ;;  %v4356_v1 = vpop.f32.mrf.mxu0 }
 0x23d   : > { %v1029_v2 = vsel %vm863_vm3, %v1022_v0, -inf  ;;  %v1138_v17 = vsel %vm863_vm3, %v4356_v1, -inf }
 0x23e   : > { %1030 = vmax.xlane.f32.xlu2 %v1029_v2 }
 0x242   : > { %v905_v3 = vpop.f32.mrf.mxu2 }
 0x244   : > { %v1024_v4 = vpop.f32.mrf.mxu1  ;;  %v1113_v5 = vpop.f32.mrf.mxu0 }
 0x247   : > { %953 = vrot.lane.b32.xlu1 %v4329_v31, %s4191_s24 }
 0x24c   : > { %v4360_v6 = vpop.f32.mrf.mxu1  ;;  %v4362_v7 = vpop.f32.mrf.mxu0 }
 0x24d   : > { %v1141_v16 = vsel %vm863_vm3, %v4360_v6, -inf  ;;  %v1250_v18 = vsel %vm863_vm3, %v4362_v7, -inf }
 0x24f   : > { %1071 = vrot.lane.b32.xlu1 %v4329_v31, %s4192_s20 }
 0x250   : > { %1050 = vrot.lane.b32.xlu0 %v4325_v22, %s4192_s20 }
 0x254   : > { %v1136_v8 = vpop.f32.mrf.mxu1  ;;  %v1225_v9 = vpop.f32.mrf.mxu0 }
 0x256   : > { %931 = vrot.lane.b32.xlu2 %v4325_v22, %s4191_s24 }
 0x25c   : > { %v1246_v10 = vpop.f32.mrf.mxu1 }
 0x25d   : > { %v1253_v15 = vsel %vm863_vm3, %v1246_v10, -inf }
 0x264   : > { %v1248_v13 = vpop.f32.mrf.mxu1 }
 0x279   : > { %1254 = vmax.xlane.f32.xlu1 %v1253_v15 }
 0x27a   : > { %1142 = vmax.xlane.f32.xlu0 %v1141_v16 }
 0x27f   : > { %1139 = vmax.xlane.f32.xlu2 %v1138_v17 }
 0x282   : > { %1251 = vmax.xlane.f32.xlu0 %v1250_v18 }
 0x2a1   : > { %v1028_v19 = vpop.xlane.xlu1 %1027  ;;  %v909_v20 = vpop.xlane.xlu2 %908 }
 0x2a2   : > { %v1032_v21 = vsub.f32 %v996_v57, %v1028_v19  ;;  %v913_v23 = vsub.f32 %v879_v56, %v909_v20 }
 0x2a4   : > { %v1034_v24 = vmul.f32 1.442695, %v1032_v21  ;;  %v915_v25 = vmul.f32 1.442695, %v913_v23 }
 0x2a6   : > { %4082 = vpow2.f32 %v1034_v24 }
 0x2a7   : > { %4084 = vpow2.f32 %v915_v25 }
 0x2ac   : > { %v4374_v26 = vpop.eup %4082 }
 0x2ad   : > { %v4376_v27 = vpop.eup %4084  ;;  %v1038_v28 = vsel %vm863_vm3, %v4374_v26, 0.0 }
 0x2ae   : > { %1039 = vadd.xlane.f32.xlu0 %v1038_v28  ;;  %v919_v29 = vsel %vm863_vm3, %v4376_v27, 0.0 }
 0x2af   : > { %920 = vadd.xlane.f32.xlu1 %v919_v29  ;;  %v912_v30 = vpop.xlane.xlu0 %911 }
 0x2b0   : > { %v914_v32 = vsub.f32 %v903_v62, %v912_v30 }
 0x2b1   : > { %v1031_v33 = vpop.xlane.xlu2 %1030 }
 0x2b2   : > { %v917_v34 = vmul.f32 1.442695, %v914_v32  ;;  %v1033_v35 = vsub.f32 %v1022_v0, %v1031_v33 }
 0x2b4   : > { %4086 = vpow2.f32 %v917_v34  ;;  %v1036_v36 = vmul.f32 1.442695, %v1033_v35 }
 0x2b6   : > { %4088 = vpow2.f32 %v1036_v36 }
 0x2b9   : > { %v954_v37 = vpop.permute.xlu1 %953  ;;  %v932_v38 = vpop.permute.xlu2 %931 }
 0x2ba   : > { %v4382_v39 = vpop.eup %4086  ;;  %v938_v40 = vsel %vm936_vm4, %v932_v38, 0  ;;  %v959_v41 = vsel %vm936_vm4, %v954_v37, 0 }
 0x2bb   : > { %947 = vmatpush.bf16.msra.mxu3 %v938_v40  ;;  %v922_v42 = vsel %vm863_vm3, %v4382_v39, 0.0 }
 0x2bc   : > { %v4388_v43 = vpop.eup %4088  ;;  %923 = vadd.xlane.f32.xlu0 %v922_v42 }
 0x2bd   : > { %v1041_v44 = vsel %vm863_vm3, %v4388_v43, 0.0 }
 0x2be   : > { %1042 = vadd.xlane.f32.xlu2 %v1041_v44 }
 0x2bf   : > { %968 = vmatpush.bf16.msrb.mxu3 %v959_v41 }
 0x2c1   : > { %v1072_v47 = vpop.permute.xlu1 %1071 }
 0x2c2   : > { %v1051_v45 = vpop.permute.xlu0 %1050  ;;  %v1077_v15 = vsel %vm936_vm4, %v1072_v47, 0 }
 0x2c3   : > { %v1056_v46 = vsel %vm936_vm4, %v1051_v45, 0 }
 0x2c4   : > { %1065 = vmatpush.bf16.msrb.mxu2 %v1056_v46 }
 0x2c8   : > { %1183 = vrot.lane.b32.xlu1 %v4329_v31, %s4193_s25 }
 0x2d6   : > { %1162 = vrot.lane.b32.xlu2 %v4325_v22, %s4193_s25 }
 0x2ec   : > { %v1255_v48 = vpop.xlane.xlu1 %1254 }
 0x2ed   : > { %v1257_v49 = vsub.f32 %v1246_v10, %v1255_v48  ;;  %v1143_v50 = vpop.xlane.xlu0 %1142 }
 0x2ee   : > { %v1145_v51 = vsub.f32 %v4360_v6, %v1143_v50 }
 0x2ef   : > { %v1260_v53 = vmul.f32 1.442695, %v1257_v49 }
 0x2f0   : > { %v1148_v52 = vmul.f32 1.442695, %v1145_v51 }
 0x2f2   : > { %4090 = vpow2.f32 %v1148_v52  ;;  %v1140_v54 = vpop.xlane.xlu2 %1139 }
 0x2f3   : > { %v1144_v55 = vsub.f32 %v4356_v1, %v1140_v54  ;;  %4092 = vpow2.f32 %v1260_v53 }
 0x2f5   : > { %v1146_v56 = vmul.f32 1.442695, %v1144_v55  ;;  %v1252_v57 = vpop.xlane.xlu0 %1251 }
 0x2f6   : > { %v1256_v58 = vsub.f32 %v4362_v7, %v1252_v57 }
 0x2f7   : > { %4094 = vpow2.f32 %v1146_v56 }
 0x2f8   : > { %v4091_v59 = vpop.eup %4090  ;;  %v1258_v60 = vmul.f32 1.442695, %v1256_v58 }
 0x2f9   : > { %v1153_v61 = vsel %vm863_vm3, %v4091_v59, 0.0  ;;  %v4399_v62 = vpop.eup %4092 }
 0x2fa   : > { %4096 = vpow2.f32 %v1258_v60  ;;  %1154 = vadd.xlane.f32.xlu0 %v1153_v61  ;;  %v1265_v1 = vsel %vm863_vm3, %v4399_v62, 0.0 }
 0x2fd   : > { %v4095_v63 = vpop.eup %4094 }
 0x2fe   : > { %v1150_v0 = vsel %vm863_vm3, %v4095_v63, 0.0 }
 0x2ff   : > { %1151 = vadd.xlane.f32.xlu1 %v1150_v0  ;;  %1266 = vadd.xlane.f32.xlu2 %v1265_v1 }
 0x300   : > { %v4097_v2 = vpop.eup %4096 }
 0x301   : > { %v1262_v3 = vsel %vm863_vm3, %v4097_v2, 0.0 }
 0x302   : > { %1263 = vadd.xlane.f32.xlu0 %v1262_v3  ;;  %v3857_v3 = vld [vmem:[%s4284_s26 + $0x8] sm:$0xff] }
 0x303   : > { %1371 = vmatpush.bf16.msra.mxu0 %v3857_v3  ;;  %v3182_v3 = vld [vmem:[%s4289_s29 + $0x40] sm:$0xf0] }
 0x316   : > { %1274 = vrot.lane.b32.xlu0 %v4325_v22, %s4194_s27 }
 0x318   : > { %1295 = vrot.lane.b32.xlu1 %v4329_v31, %s4194_s27 }
 0x321   : > { %v1040_v4 = vpop.xlane.xlu0 %1039 }
 0x322   : > { %4098 = vrcp.f32 %v1040_v4  ;;  %v921_v5 = vpop.xlane.xlu1 %920  ;;  %v3856_v4 = vld [vmem:[%s4284_s26] sm:$0xff] }
 0x323   : > { %4100 = vrcp.f32 %v921_v5  ;;  %1372 = vmatpush.bf16.msra.mxu0 %v3856_v4  ;;  %v3188_v4 = vld [vmem:[%s4289_s29 + $0x8] sm:$0xf] }
 0x328   : > { %v4099_v6 = vpop.eup %4098 }
 0x329   : > { %v4101_v7 = vpop.eup %4100  ;;  %v1046_v8 = vmul.f32 %v4099_v6, %v4374_v26 }
 0x32a   : > { %v927_v9 = vmul.f32 %v4101_v7, %v4376_v27 }
 0x32b   : > { %v1048_v10 = vpack.c.bf16 %v1046_v8, %v1046_v8 }
 0x32c   : > { %v929_v13 = vpack.c.bf16 %v927_v9, %v927_v9 }
 0x32d   : > { %3159 = vmatmul.msk.bf16.vlgmr.msrb.gmra.mxu2 %vm863_vm3, %v1048_v10 }
 0x32e   : > { %3155 = vmatmul.msk.bf16.vlgmr.msra.gmra.mxu3 %vm863_vm3, %v929_v13 }
 0x32f   : > { %1086 = vmatpush.bf16.msra.mxu3 %v1077_v15  ;;  %v924_v22 = vpop.xlane.xlu0 %923 }
 0x330   : > { %4102 = vrcp.f32 %v924_v22 }
 0x331   : > { %v1043_v31 = vpop.xlane.xlu2 %1042 }
 0x332   : > { %4104 = vrcp.f32 %v1043_v31 }
 0x336   : > { %v4103_v16 = vpop.eup %4102 }
 0x337   : > { %v928_v17 = vmul.f32 %v4103_v16, %v4382_v39 }
 0x338   : > { %v4105_v24 = vpop.eup %4104 }
 0x339   : > { %v1163_v18 = vpop.permute.xlu2 %1162  ;;  %v930_v21 = vpack.c.bf16 %v928_v17, %v928_v17  ;;  %v1047_v25 = vmul.f32 %v4105_v24, %v4388_v43 }
 0x33a   : > { %v1168_v19 = vsel %vm936_vm4, %v1163_v18, 0  ;;  %v1184_v20 = vpop.permute.xlu1 %1183 }
 0x33b   : > { %1177 = vmatpush.bf16.msra.mxu2 %v1168_v19  ;;  %v1189_v23 = vsel %vm936_vm4, %v1184_v20, 0  ;;  %v1049_v26 = vpack.c.bf16 %v1047_v25, %v1047_v25 }
 0x33e   : > { %3156 = vmatmul.msk.bf16.vlgmr.msrb.gmra.mxu3 %vm863_vm3, %v930_v21 }
 0x33f   : > { %1198 = vmatpush.bf16.msrb.mxu3 %v1189_v23  ;;  %v1349_v23 = vperm.slane %v4322_v14, 1 }
 0x34e   : > { %3160 = vmatmul.msk.bf16.vlgmr.msra.gmra.mxu3 %vm863_vm3, %v1049_v26 }
 0x36d   : > { %v1155_v27 = vpop.xlane.xlu0 %1154 }
 0x36e   : > { %4106 = vrcp.f32 %v1155_v27 }
 0x372   : > { %v1152_v28 = vpop.xlane.xlu1 %1151  ;;  %v1267_v35 = vpop.xlane.xlu2 %1266 }
 0x373   : > { %4108 = vrcp.f32 %v1152_v28 }
 0x374   : > { %v4107_v29 = vpop.eup %4106  ;;  %4110 = vrcp.f32 %v1267_v35 }
 0x375   : > { %v1159_v30 = vmul.f32 %v4107_v29, %v4091_v59  ;;  %v1264_v37 = vpop.xlane.xlu0 %1263 }
 0x376   : > { %4112 = vrcp.f32 %v1264_v37 }
 0x377   : > { %v1161_v32 = vpack.c.bf16 %v1159_v30, %v1159_v30 }
 0x379   : > { %3164 = vmatmul.msk.bf16.vlgmr.msrb.gmra.mxu3 %vm863_vm3, %v1161_v32  ;;  %v4109_v33 = vpop.eup %4108 }
 0x37a   : > { %v1158_v34 = vmul.f32 %v4109_v33, %v4095_v63  ;;  %v4111_v38 = vpop.eup %4110  ;;  %v4198_v33 = vmov 32.0  }
 0x37b   : > { %v1271_v41 = vmul.f32 %v4111_v38, %v4399_v62  ;;  %4114 = vrcp.f32 %v4198_v33 }
 0x37c   : > { %v1160_v36 = vpack.c.bf16 %v1158_v34, %v1158_v34  ;;  %v4113_v39 = vpop.eup %4112 }
 0x37d   : > { %v1270_v42 = vmul.f32 %v4113_v39, %v4097_v2  ;;  %v1273_v46 = vpack.c.bf16 %v1271_v41, %v1271_v41 }
 0x37e   : > { %3163 = vmatmul.msk.bf16.vlgmr.msra.gmra.mxu2 %vm863_vm3, %v1160_v36 }
 0x37f   : > { %v1272_v47 = vpack.c.bf16 %v1270_v42, %v1270_v42 }
 0x381   : > { %v4115_v34 = vpop.eup %4114 }
 0x382   : > { %v1388_v35 = vmul.f32 32.0, %v4115_v34  ;;  %vm1392_vm7 = vweird.f32 %v4115_v34 }
 0x384   : > { %v1389_v36 = vsub.f32 1.0, %v1388_v35  ;;  %v3198_v35 = vld [vmem:[%s4289_s29 + $0x50] sm:$0xf0] }
 0x386   : > { %v1390_v37 = vmul.f32 %v4115_v34, %v1389_v36  ;;  %v3204_v36 = vld [vmem:[%s4289_s29 + $0x18] sm:$0xf] }
 0x388   : > { %v1275_v40 = vpop.permute.xlu0 %1274  ;;  %v1391_v38 = vadd.f32 %v4115_v34, %v1390_v37  ;;  %v3869_v37 = vld [vmem:[%s4289_s29 + $0x54] sm:$0xf0] }
 0x389   : > { %v1280_v43 = vsel %vm936_vm4, %v1275_v40, 0 }
 0x38a   : > { %1289 = vmatpush.bf16.msrb.mxu2 %v1280_v43  ;;  %v1296_v44 = vpop.permute.xlu1 %1295 }
 0x38b   : > { %v1301_v45 = vsel %vm936_vm4, %v1296_v44, 0 }
 0x38c   : > { %1310 = vmatpush.bf16.msra.mxu3 %v1301_v45 }
 0x38e   : > { %3167 = vmatmul.msk.bf16.vlgmr.msrb.gmra.mxu2 %vm863_vm3, %v1272_v47 }
 0x38f   : > { %3168 = vmatmul.msk.bf16.vlgmr.msra.gmra.mxu3 %vm863_vm3, %v1273_v46 }
 0x3b0   : > { %v1067_v48 = vpop.f32.mrf.mxu2 }
 0x3b1   : > { %v949_v49 = vpop.f32.mrf.mxu3 }
 0x3b8   : > { %v1069_v50 = vpop.f32.mrf.mxu2 }
 0x3b9   : > { %v951_v51 = vpop.f32.mrf.mxu3  ;;  %v3874_v50 = vld [vmem:[%s4289_s29 + $0x84] sm:$0xf] }
 0x3c1   : > { %v970_v52 = vpop.f32.mrf.mxu3 }
 0x3c9   : > { %v972_v53 = vpop.f32.mrf.mxu3 }
 0x3ca   : > { %v3246_v53 = vld [vmem:[%s4289_s29 + $0xc0] sm:$0xf0] }
 0x3d1   : > { %v1088_v54 = vpop.f32.mrf.mxu3 }
 0x3d2   : > { %v4067_v55 = vpack.i.bf16 %v1088_v54, %v1067_v48  ;;  %v3244_v48 = vld [vmem:[%s4289_s29 + $0x80] sm:$0xf]  ;;  %v3252_v54 = vld [vmem:[%s4289_s29 + $0x88] sm:$0xf] }
 0x3d4   : > { %4068 = vrot.lane.b32.xlu0 %v4067_v55, %s4195_s28  ;;  %v3883_v55 = vld [vmem:[%s4289_s29 + $0xc4] sm:$0xf0] }
 0x3d9   : > { %v1090_v56 = vpop.f32.mrf.mxu3 }
 0x3fc   : > { %v1200_v57 = vpop.f32.mrf.mxu3 }
 0x401   : > { %v1179_v58 = vpop.f32.mrf.mxu2 }
 0x402   : > { %v4072_v59 = vpack.i.bf16 %v1200_v57, %v1179_v58  ;;  %v3249_v57 = vor.u32 %v3874_v50, %v3246_v53  ;;  %v3253_v58 = vor.u32 %v3883_v55, %v3252_v54  ;;  %v1432_v54 = vperm.slane %v4322_v14, 4 }
 0x404   : > { %v1202_v60 = vpop.f32.mrf.mxu3  ;;  %4073 = vrot.lane.b32.xlu1 %v4072_v59, %s4196_s14  ;;  %v3875_v59 = vld [vmem:[%s4289_s29 + $0x8c] sm:$0xf]  ;;  %1638 = vmatpush.bf16.msra.mxu2 %v3249_v57 }
 0x405   : > { %v3254_v60 = vld [vmem:[%s4289_s29 + $0xc8] sm:$0xf0]  ;;  %1652 = vmatpush.bf16.msrb.mxu3 %v3253_v58  ;;  %v1435_v58 = vperm.slane %v4322_v14, 5  ;;  %v3887_v14 = vld [vmem:[%s4289_s29 + $0xe4] sm:$0xf0] }
 0x409   : > { %v1181_v61 = vpop.f32.mrf.mxu2 }
 0x40a   : > { %v3257_v61 = vor.u32 %v3875_v59, %v3254_v60 }
 0x40c   : > { %1666 = vmatpush.bf16.msrb.mxu0 %v3257_v61 }
 0x411   : > { %v1291_v62 = vpop.f32.mrf.mxu2 }
 0x412   : > { %v1312_v63 = vpop.f32.mrf.mxu3 }
 0x413   : > { %v4077_v0 = vpack.i.bf16 %v1312_v63, %v1291_v62  ;;  %v3180_v63 = vld [vmem:[%s4289_s29] sm:$0xf] }
 0x415   : > { %4078 = vrot.lane.b32.xlu0 %v4077_v0, %s4197_s17  ;;  %v3866_v0 = vld [vmem:[%s4289_s29 + $0x3c] sm:$0xf0] }
 0x419   : > { %v1293_v1 = vpop.f32.mrf.mxu2 }
 0x41a   : > { %v1314_v2 = vpop.f32.mrf.mxu3  ;;  %v3181_v1 = vor.u32 %v3866_v0, %v3180_v63  ;;  %v3886_v63 = vld [vmem:[%s4289_s29 + $0xdc] sm:$0xf0]  ;;  %v3878_v0 = vld [vmem:[%s4289_s29 + $0xa4] sm:$0xf] }
 0x41b   : > { %v3858_v2 = vld [vmem:[%s4289_s29 + $0x4] sm:$0xf] }
 0x446   : > { %v4069_v5 = vpop.permute.xlu0 %4068 }
 0x447   : > { %v4071_v7 = vunpack.i.h.bf16 %v4069_v5  ;;  %v4070_v8 = vunpack.i.l.bf16 %v4069_v5  ;;  %v3185_v5 = vor.u32 %v3858_v2, %v3182_v3 }
 0x449   : > { %v1341_v15 = vsel %vm863_vm3, %v970_v52, %v4071_v7  ;;  %v1340_v22 = vsel %vm863_vm3, %v949_v49, %v4070_v8  ;;  %v3882_v49 = vld [vmem:[%s4289_s29 + $0xbc] sm:$0xf0]  ;;  %v3859_v7 = vld [vmem:[%s4289_s29 + $0xc] sm:$0xf]  ;;  %1639 = vmatpush.bf16.msra.mxu2 %v3185_v5 }
 0x44a   : > { %v3245_v52 = vor.u32 %v3882_v49, %v3244_v48  ;;  %v3190_v8 = vld [vmem:[%s4289_s29 + $0x48] sm:$0xf0] }
 0x44c   : > { %1624 = vmatpush.bf16.msra.mxu1 %v3245_v52 }
 0x450   : > { %1625 = vmatpush.bf16.msra.mxu1 %v3181_v1  ;;  %v3284_v1 = vld [vmem:[%s4289_s29 + $0xa8] sm:$0xf] }
 0x476   : > { %v4074_v6 = vpop.permute.xlu1 %4073 }
 0x477   : > { %v4076_v9 = vunpack.i.h.bf16 %v4074_v6  ;;  %v4075_v10 = vunpack.i.l.bf16 %v4074_v6  ;;  %v3867_v6 = vld [vmem:[%s4289_s29 + $0x44] sm:$0xf0] }
 0x479   : > { %v1344_v17 = vsel %vm1342_vm5, %v1341_v15, %v4076_v9  ;;  %v1343_v18 = vsel %vm1342_vm5, %v1340_v22, %v4075_v10  ;;  %v3189_v9 = vor.u32 %v3867_v6, %v3188_v4  ;;  %v3193_v10 = vor.u32 %v3859_v7, %v3190_v8  ;;  %v3260_v15 = vld [vmem:[%s4289_s29 + $0x90] sm:$0xf]  ;;  %v3879_v4 = vld [vmem:[%s4289_s29 + $0xac] sm:$0xf]  ;;  %v3212_v8 = vld [vmem:[%s4289_s29 + $0x20] sm:$0xf] }
 0x47a   : > { %v3884_v22 = vld [vmem:[%s4289_s29 + $0xcc] sm:$0xf0] }
 0x47b   : > { %1653 = vmatpush.bf16.msrb.mxu3 %v3189_v9  ;;  %1667 = vmatpush.bf16.msrb.mxu0 %v3193_v10  ;;  %v3870_v9 = vld [vmem:[%s4289_s29 + $0x5c] sm:$0xf0]  ;;  %v3285_v10 = vor.u32 %v3887_v14, %v3284_v1  ;;  %v3893_v1 = vld [vmem:[%s4294_s16 + $0x18] sm:$0xff] }
 0x47c   : > { %v3917_v14 = vld [vmem:[%s4294_s16 + $0xd8] sm:$0xff] }
 0x487   : > { %v4079_v13 = vpop.permute.xlu0 %4078 }
 0x488   : > { %v4081_v31 = vunpack.i.h.bf16 %v4079_v13  ;;  %v4080_v16 = vunpack.i.l.bf16 %v4079_v13 }
 0x48a   : > { %v1346_v19 = vsel %vm1345_vm6, %v1343_v18, %v4080_v16  ;;  %v1347_v20 = vsel %vm1345_vm6, %v1344_v17, %v4081_v31  ;;  %v3876_v31 = vld [vmem:[%s4289_s29 + $0x94] sm:$0xf]  ;;  %v3261_v17 = vor.u32 %v3884_v22, %v3260_v15  ;;  %v3862_v15 = vld [vmem:[%s4289_s29 + $0x24] sm:$0xf] }
 0x48b   : > { %v1348_v21 = vpack.c.bf16 %v1347_v20, %v1346_v19  ;;  %v3262_v18 = vld [vmem:[%s4289_s29 + $0xd0] sm:$0xf0]  ;;  %v3268_v19 = vld [vmem:[%s4289_s29 + $0x98] sm:$0xf]  ;;  %v3214_v22 = vld [vmem:[%s4289_s29 + $0x60] sm:$0xf0] }
 0x48c   : > { %v3885_v20 = vld [vmem:[%s4289_s29 + $0xd4] sm:$0xf0]  ;;  %1680 = vmatpush.bf16.msrb.mxu1 %v3261_v17  ;;  %v3863_v17 = vld [vmem:[%s4289_s29 + $0x2c] sm:$0xf] }
 0x48d   : > { %3177 = vmatmul.msk.bf16.vlgmr.msra.gmra.mxu0 %vm834_vm2, %v1348_v21  ;;  %v3265_v21 = vor.u32 %v3876_v31, %v3262_v18  ;;  %v3220_v31 = vld [vmem:[%s4289_s29 + $0x28] sm:$0xf]  ;;  %v3222_v18 = vld [vmem:[%s4289_s29 + $0x68] sm:$0xf0] }
 0x48f   : > { %1694 = vmatpush.bf16.msrb.mxu2 %v3265_v21 }
 0x50a   : > { %v1374_v24 = vpop.f32.mrf.mxu0 }
 0x50b   : > { %v1375_v25 = vadd.f32 %v1374_v24, %v1349_v23  ;;  %v3877_v24 = vld [vmem:[%s4289_s29 + $0x9c] sm:$0xf] }
 0x50d   : > { %v1379_v26 = vadd.f32 %v1375_v25, %v4314_v11  ;;  %v4435_v11 = vsel %vm1392_vm7, %v4115_v34, %v1391_v38  ;;  %v3270_v25 = vld [vmem:[%s4289_s29 + $0xd8] sm:$0xf0] }
 0x50f   : > { %v1381_v27 = vsel %vm834_vm2, %v1379_v26, 0.0 }
 0x510   : > { %1382 = vadd.xlane.f32.xlu1 %v1381_v27 }
 0x512   : > { %v1376_v28 = vpop.f32.mrf.mxu0 }
 0x513   : > { %v1377_v29 = vadd.f32 %v1376_v28, %v1349_v23  ;;  %v3269_v23 = vor.u32 %v3885_v20, %v3268_v19  ;;  %v3213_v19 = vor.u32 %v3870_v9, %v3212_v8  ;;  %v3217_v20 = vor.u32 %v3862_v15, %v3214_v22  ;;  %v3900_v8 = vld [vmem:[%s4294_s16 + $0x50] sm:$0xff]  ;;  %v3907_v15 = vld [vmem:[%s4294_s16 + $0x88] sm:$0xff]  ;;  %v3890_v22 = vld [vmem:[%s4294_s16] sm:$0xff] }
 0x514   : > { %v3908_v9 = vld [vmem:[%s4294_s16 + $0x90] sm:$0xff] }
 0x515   : > { %v1380_v30 = vadd.f32 %v1377_v29, %v4316_v12  ;;  %v3273_v29 = vor.u32 %v3877_v24, %v3270_v25  ;;  %1708 = vmatpush.bf16.msra.mxu3 %v3269_v23  ;;  %v3225_v23 = vor.u32 %v3863_v17, %v3222_v18  ;;  %v3292_v24 = vld [vmem:[%s4289_s29 + $0xb0] sm:$0xf]  ;;  %v3953_v17 = vld [vmem:[%s4294_s16 + $0x1f8] sm:$0xff]  ;;  %v3898_v18 = vld [vmem:[%s4294_s16 + $0x40] sm:$0xff] }
 0x516   : > { %v3888_v25 = vld [vmem:[%s4289_s29 + $0xec] sm:$0xf0] }
 0x517   : > { %v1384_v32 = vsel %vm834_vm2, %v1380_v30, 0.0  ;;  %1722 = vmatpush.bf16.msra.mxu0 %v3273_v29  ;;  %v3889_v29 = vld [vmem:[%s4289_s29 + $0xf4] sm:$0xf0] }
 0x518   : > { %1385 = vadd.xlane.f32.xlu2 %v1384_v32  ;;  %v3860_v32 = vld [vmem:[%s4289_s29 + $0x14] sm:$0xf] }
 0x519   : > { %v3201_v38 = vor.u32 %v3860_v32, %v3198_v35  ;;  %v3302_v32 = vld [vmem:[%s4289_s29 + $0xf8] sm:$0xf0]  ;;  %v3228_v35 = vld [vmem:[%s4289_s29 + $0x30] sm:$0xf] }
 0x51b   : > { %1695 = vmatpush.bf16.msrb.mxu2 %v3201_v38 }
 0x583   : > { %v1383_v39 = vpop.xlane.xlu1 %1382 }
 0x584   : > { %v1394_v40 = vmul.f32 %v4435_v11, %v1383_v39  ;;  %v3205_v39 = vor.u32 %v3869_v37, %v3204_v36  ;;  %v3872_v36 = vld [vmem:[%s4289_s29 + $0x6c] sm:$0xf0] }
 0x586   : > { %v4438_v12 = vsub.f32 %v1379_v26, %v1394_v40  ;;  %v3196_v26 = vld [vmem:[%s4289_s29 + $0x10] sm:$0xf]  ;;  %v3861_v40 = vld [vmem:[%s4289_s29 + $0x1c] sm:$0xf]  ;;  %1709 = vmatpush.bf16.msra.mxu3 %v3205_v39  ;;  %v3864_v39 = vld [vmem:[%s4289_s29 + $0x34] sm:$0xf] }
 0x588   : > { %v1398_v41 = vmul.f32 %v4438_v12, %v4438_v12 }
 0x58a   : > { %v1400_v42 = vsel %vm834_vm2, %v1398_v41, 0.0  ;;  %v3206_v41 = vld [vmem:[%s4289_s29 + $0x58] sm:$0xf0] }
 0x58b   : > { %v1386_v43 = vpop.xlane.xlu2 %1385  ;;  %1401 = vadd.xlane.f32.xlu0 %v1400_v42 }
 0x58c   : > { %v1395_v44 = vmul.f32 %v4435_v11, %v1386_v43  ;;  %v3209_v43 = vor.u32 %v3861_v40, %v3206_v41  ;;  %v3230_v40 = vld [vmem:[%s4289_s29 + $0x70] sm:$0xf0]  ;;  %v3236_v41 = vld [vmem:[%s4289_s29 + $0x38] sm:$0xf] }
 0x58e   : > { %v4444_v45 = vsub.f32 %v1380_v30, %v1395_v44  ;;  %v3868_v30 = vld [vmem:[%s4289_s29 + $0x4c] sm:$0xf0]  ;;  %1723 = vmatpush.bf16.msra.mxu0 %v3209_v43  ;;  %v3865_v43 = vld [vmem:[%s4289_s29 + $0x3c] sm:$0xf] }
 0x58f   : > { %v3197_v34 = vor.u32 %v3868_v30, %v3196_v26  ;;  %v3880_v26 = vld [vmem:[%s4289_s29 + $0xb4] sm:$0xf]  ;;  %v3881_v30 = vld [vmem:[%s4289_s29 + $0xbc] sm:$0xf] }
 0x590   : > { %v1399_v46 = vmul.f32 %v4444_v45, %v4444_v45  ;;  %v3305_v38 = vor.u32 %v3881_v30, %v3302_v32  ;;  %v3950_v30 = vld [vmem:[%s4294_s16 + $0x1e0] sm:$0xff]  ;;  %v3935_v32 = vld [vmem:[%s4294_s16 + $0x168] sm:$0xff] }
 0x591   : > { %1681 = vmatpush.bf16.msrb.mxu1 %v3197_v34 }
 0x592   : > { %v1403_v47 = vsel %vm834_vm2, %v1399_v46, 0.0 }
 0x593   : > { %1404 = vadd.xlane.f32.xlu2 %v1403_v47 }
 0x5fe   : > { %v1402_v51 = vpop.xlane.xlu0 %1401 }
 0x5ff   : > { %v1406_v56 = vmul.f32 %v1402_v51, %v4435_v11 }
 0x601   : > { %v4458_v62 = vadd.f32 1e-05, %v1406_v56 }
 0x603   : > { %4116 = vrsqrt.f32 %v4458_v62  ;;  %vm1416_vm9 = vweird.f32 %v4458_v62 }
 0x606   : > { %v1405_v13 = vpop.xlane.xlu2 %1404 }
 0x607   : > { %v1407_v16 = vmul.f32 %v1405_v13, %v4435_v11 }
 0x609   : > { %v4117_v27 = vpop.eup %4116  ;;  %v1409_v28 = vadd.f32 1e-05, %v1407_v16  ;;  %v3871_v16 = vld [vmem:[%s4289_s29 + $0x64] sm:$0xf0] }
 0x60a   : > { %v1411_v33 = vmul.f32 %v4117_v27, %v4458_v62  ;;  %vm1417_vm8 = vweird.f32 %v4117_v27  ;;  %v3276_v62 = vld [vmem:[%s4289_s29 + $0xa0] sm:$0xf]  ;;  %v3221_v21 = vor.u32 %v3871_v16, %v3220_v31  ;;  %v3929_v16 = vld [vmem:[%s4294_s16 + $0x138] sm:$0xff] }
 0x60b   : > { %4118 = vrsqrt.f32 %v1409_v28  ;;  %vm1418_vm10 = vmor %vm1416_vm9, %vm1417_vm8  ;;  %vm1426_vm12 = vweird.f32 %v1409_v28  ;;  %v3277_v6 = vor.u32 %v3886_v63, %v3276_v62  ;;  %v3894_v62 = vld [vmem:[%s4294_s16 + $0x20] sm:$0xff] }
 0x60c   : > { %v1412_v42 = vmul.f32 %v4117_v27, %v1411_v33  ;;  %v3293_v33 = vor.u32 %v3888_v25, %v3292_v24  ;;  %v3918_v63 = vld [vmem:[%s4294_s16 + $0xe0] sm:$0xff]  ;;  %v3952_v24 = vld [vmem:[%s4294_s16 + $0x1f0] sm:$0xff] }
 0x60d   : > { %v3914_v31 = vld [vmem:[%s4294_s16 + $0xc0] sm:$0xff]  ;;  %v3936_v25 = vld [vmem:[%s4294_s16 + $0x170] sm:$0xff] }
 0x60e   : > { %v1413_v44 = vmul.f32 0.5, %v1412_v42  ;;  %v3873_v42 = vld [vmem:[%s4289_s29 + $0x74] sm:$0xf0] }
 0x610   : > { %v1414_v46 = vsub.f32 1.5, %v1413_v44  ;;  %v3238_v44 = vld [vmem:[%s4289_s29 + $0x78] sm:$0xf0] }
 0x611   : > { %v4119_v47 = vpop.eup %4118 }
 0x612   : > { %v1415_v48 = vmul.f32 %v4117_v27, %v1414_v46  ;;  %v1421_v49 = vmul.f32 %v4119_v47, %v1409_v28  ;;  %vm1427_vm11 = vweird.f32 %v4119_v47  ;;  %v3300_v28 = vld [vmem:[%s4289_s29 + $0xb8] sm:$0xf]  ;;  %v3229_v46 = vor.u32 %v3872_v36, %v3228_v35  ;;  %v3934_v36 = vld [vmem:[%s4294_s16 + $0x160] sm:$0xff] }
 0x613   : > { %vm1428_vm13 = vmor %vm1426_vm12, %vm1427_vm11  ;;  %v3301_v37 = vor.u32 %v3889_v29, %v3300_v28  ;;  %v3951_v28 = vld [vmem:[%s4294_s16 + $0x1e8] sm:$0xff]  ;;  %v3926_v29 = vld [vmem:[%s4294_s16 + $0x120] sm:$0xff] }
 0x614   : > { %v1422_v50 = vmul.f32 %v4119_v47, %v1421_v49  ;;  %v1419_v51 = vsel %vm1418_vm10, %v4117_v27, %v1415_v48  ;;  %v3294_v27 = vld [vmem:[%s4289_s29 + $0xf0] sm:$0xf0]  ;;  %v3237_v48 = vor.u32 %v3873_v42, %v3236_v41  ;;  %v3241_v49 = vor.u32 %v3865_v43, %v3238_v44  ;;  %v3949_v35 = vld [vmem:[%s4294_s16 + $0x1d8] sm:$0xff]  ;;  %v3923_v42 = vld [vmem:[%s4294_s16 + $0x108] sm:$0xff] }
 0x615   : > { %v1430_v55 = vmul.f32 %v1419_v51, %v4438_v12  ;;  %v3278_v12 = vld [vmem:[%s4289_s29 + $0xe0] sm:$0xf0]  ;;  %v3297_v34 = vor.u32 %v3880_v26, %v3294_v27  ;;  %v3921_v51 = vld [vmem:[%s4294_s16 + $0xf8] sm:$0xff]  ;;  %v3944_v26 = vld [vmem:[%s4294_s16 + $0x1b0] sm:$0xff] }
 0x616   : > { %v1423_v52 = vmul.f32 0.5, %v1422_v50  ;;  %v3281_v7 = vor.u32 %v3878_v0, %v3278_v12  ;;  %v3897_v50 = vld [vmem:[%s4294_s16 + $0x38] sm:$0xff]  ;;  %v3902_v0 = vld [vmem:[%s4294_s16 + $0x60] sm:$0xff]  ;;  %v3927_v27 = vld [vmem:[%s4294_s16 + $0x128] sm:$0xff] }
 0x617   : > { %v1433_v59 = vmul.f32 %v1432_v54, %v1430_v55  ;;  %v3920_v55 = vld [vmem:[%s4294_s16 + $0xf0] sm:$0xff]  ;;  %v3910_v12 = vld [vmem:[%s4294_s16 + $0xa0] sm:$0xff]  ;;  %v3941_v41 = vld [vmem:[%s4294_s16 + $0x198] sm:$0xff] }
 0x618   : > { %v1424_v53 = vsub.f32 1.5, %v1423_v52  ;;  %v3905_v52 = vld [vmem:[%s4294_s16 + $0x78] sm:$0xff]  ;;  %v3947_v43 = vld [vmem:[%s4294_s16 + $0x1c8] sm:$0xff]  ;;  %v3932_v44 = vld [vmem:[%s4294_s16 + $0x150] sm:$0xff] }
 0x619   : > { %v4497_v2 = vadd.f32 %v1435_v58, %v1433_v59  ;;  %v3919_v59 = vld [vmem:[%s4294_s16 + $0xe8] sm:$0xff] }
 0x61a   : > { %v1425_v56 = vmul.f32 %v4119_v47, %v1424_v53  ;;  %v3913_v53 = vld [vmem:[%s4294_s16 + $0xb8] sm:$0xff] }
 0x61c   : > { %v1429_v57 = vsel %vm1428_vm13, %v4119_v47, %v1425_v56  ;;  %v3233_v47 = vor.u32 %v3864_v39, %v3230_v40  ;;  %v3904_v56 = vld [vmem:[%s4294_s16 + $0x70] sm:$0xff]  ;;  %v3933_v40 = vld [vmem:[%s4294_s16 + $0x158] sm:$0xff] }
 0x61d   : > { %v1431_v60 = vmul.f32 %v1429_v57, %v4444_v45  ;;  %v3286_v45 = vld [vmem:[%s4289_s29 + $0xe8] sm:$0xf0]  ;;  %v3912_v57 = vld [vmem:[%s4294_s16 + $0xb0] sm:$0xff] }
 0x61e   : > { %v3289_v13 = vor.u32 %v3879_v4, %v3286_v45  ;;  %v3901_v4 = vld [vmem:[%s4294_s16 + $0x58] sm:$0xff]  ;;  %v3948_v39 = vld [vmem:[%s4294_s16 + $0x1d0] sm:$0xff] }
 0x61f   : > { %v1434_v61 = vmul.f32 %v1432_v54, %v1431_v60  ;;  %v3896_v54 = vld [vmem:[%s4294_s16 + $0x30] sm:$0xff]  ;;  %v3903_v60 = vld [vmem:[%s4294_s16 + $0x68] sm:$0xff]  ;;  %v3909_v45 = vld [vmem:[%s4294_s16 + $0x98] sm:$0xff] }
 0x621   : > { %v4499_v3 = vadd.f32 %v1435_v58, %v1434_v61  ;;  %v3895_v58 = vld [vmem:[%s4294_s16 + $0x28] sm:$0xff] }
 0x622   : > { %v3911_v61 = vld [vmem:[%s4294_s16 + $0xa8] sm:$0xff] }
 0x623   : > { %v4506_v5 = vpack.c.bf16 %v4499_v3, %v4497_v2 }
 0x625   : > { %3306 = vmatmul.msk.bf16.vlgmr.msra.gmra.mxu1 %vm834_vm2, %v4506_v5  ;;  %3307 = vmatmul.msk.bf16.vlgmr.msra.gmra.mxu2 %vm834_vm2, %v4506_v5 }
 0x626   : > { %3308 = vmatmul.msk.bf16.vlgmr.msrb.gmra.mxu3 %vm834_vm2, %v4506_v5  ;;  %3309 = vmatmul.msk.bf16.vlgmr.msrb.gmra.mxu0 %vm834_vm2, %v4506_v5 }
 0x627   : > { %1736 = vmatpush.bf16.msra.mxu1 %v3277_v6  ;;  %1750 = vmatpush.bf16.msra.mxu2 %v3281_v7  ;;  %v3892_v6 = vld [vmem:[%s4294_s16 + $0x10] sm:$0xff] }
 0x628   : > { %1764 = vmatpush.bf16.msrb.mxu3 %v3285_v10  ;;  %1778 = vmatpush.bf16.msrb.mxu0 %v3289_v13  ;;  %v3916_v7 = vld [vmem:[%s4294_s16 + $0xd0] sm:$0xff]  ;;  %v3891_v10 = vld [vmem:[%s4294_s16 + $0x8] sm:$0xff] }
 0x629   : > { %v3899_v13 = vld [vmem:[%s4294_s16 + $0x48] sm:$0xff] }
 0x62b   : > { %1737 = vmatpush.bf16.msra.mxu1 %v3213_v19  ;;  %1751 = vmatpush.bf16.msra.mxu2 %v3217_v20  ;;  %v3906_v19 = vld [vmem:[%s4294_s16 + $0x80] sm:$0xff]  ;;  %v3937_v20 = vld [vmem:[%s4294_s16 + $0x178] sm:$0xff] }
 0x62c   : > { %1765 = vmatpush.bf16.msrb.mxu3 %v3221_v21  ;;  %1779 = vmatpush.bf16.msrb.mxu0 %v3225_v23  ;;  %v3945_v21 = vld [vmem:[%s4294_s16 + $0x1b8] sm:$0xff]  ;;  %v3928_v23 = vld [vmem:[%s4294_s16 + $0x130] sm:$0xff] }
 0x635   : > { %3310 = vmatmul.msk.bf16.vlgmr.msrb.gmra.mxu1 %vm834_vm2, %v4506_v5  ;;  %3311 = vmatmul.msk.bf16.vlgmr.msrb.gmra.mxu2 %vm834_vm2, %v4506_v5 }
 0x636   : > { %3312 = vmatmul.msk.bf16.vlgmr.msra.gmra.mxu3 %vm834_vm2, %v4506_v5  ;;  %3313 = vmatmul.msk.bf16.vlgmr.msra.gmra.mxu0 %vm834_vm2, %v4506_v5 }
 0x637   : > { %1792 = vmatpush.bf16.msrb.mxu1 %v3293_v33  ;;  %1806 = vmatpush.bf16.msrb.mxu2 %v3297_v34  ;;  %v3943_v33 = vld [vmem:[%s4294_s16 + $0x1a8] sm:$0xff]  ;;  %v3925_v34 = vld [vmem:[%s4294_s16 + $0x118] sm:$0xff] }
 0x638   : > { %1820 = vmatpush.bf16.msra.mxu3 %v3301_v37  ;;  %1834 = vmatpush.bf16.msra.mxu0 %v3305_v38  ;;  %v3942_v37 = vld [vmem:[%s4294_s16 + $0x1a0] sm:$0xff]  ;;  %v3924_v38 = vld [vmem:[%s4294_s16 + $0x110] sm:$0xff] }
 0x63b   : > { %1793 = vmatpush.bf16.msrb.mxu1 %v3229_v46  ;;  %1807 = vmatpush.bf16.msrb.mxu2 %v3233_v47  ;;  %v3940_v46 = vld [vmem:[%s4294_s16 + $0x190] sm:$0xff]  ;;  %v3922_v47 = vld [vmem:[%s4294_s16 + $0x100] sm:$0xff] }
 0x63c   : > { %1821 = vmatpush.bf16.msra.mxu3 %v3237_v48  ;;  %1835 = vmatpush.bf16.msra.mxu0 %v3241_v49  ;;  %v3946_v48 = vld [vmem:[%s4294_s16 + $0x1c0] sm:$0xff]  ;;  %v3931_v49 = vld [vmem:[%s4294_s16 + $0x148] sm:$0xff] }
 0x645   : > { %3314 = vmatmul.msk.bf16.vlgmr.msra.gmra.mxu1 %vm834_vm2, %v4506_v5  ;;  %3315 = vmatmul.msk.bf16.vlgmr.msra.gmra.mxu2 %vm834_vm2, %v4506_v5 }
 0x646   : > { %3316 = vmatmul.msk.bf16.vlgmr.msrb.gmra.mxu3 %vm834_vm2, %v4506_v5  ;;  %3317 = vmatmul.msk.bf16.vlgmr.msrb.gmra.mxu0 %vm834_vm2, %v4506_v5 }
 0x647   : > { %2659 = vmatpush.bf16.msra.mxu1 %v3897_v50  ;;  %2701 = vmatpush.bf16.msrb.mxu0 %v3921_v51  ;;  %v3939_v50 = vld [vmem:[%s4294_s16 + $0x188] sm:$0xff]  ;;  %v3930_v51 = vld [vmem:[%s4294_s16 + $0x140] sm:$0xff] }
 0x648   : > { %2673 = vmatpush.bf16.msra.mxu2 %v3905_v52  ;;  %2687 = vmatpush.bf16.msrb.mxu3 %v3913_v53  ;;  %v3938_v52 = vld [vmem:[%s4294_s16 + $0x180] sm:$0xff] }
 0x64b   : > { %2660 = vmatpush.bf16.msra.mxu1 %v3896_v54  ;;  %2702 = vmatpush.bf16.msrb.mxu0 %v3920_v55  ;;  %v511_v54 = vld [vmem:[%s4299_s22 + $0x18] sm:$0xff] }
 0x64c   : > { %2674 = vmatpush.bf16.msra.mxu2 %v3904_v56  ;;  %2688 = vmatpush.bf16.msrb.mxu3 %v3912_v57  ;;  %v4630_v56 = vld [vmem:[%s4299_s22] sm:$0xff] }
 0x64d   : > { %v1439_v57 = vperm.slane %v4630_v56, 2 }
 0x64f   : > { %2661 = vmatpush.bf16.msra.mxu1 %v3895_v58  ;;  %2703 = vmatpush.bf16.msrb.mxu0 %v3919_v59  ;;  %v1442_v58 = vperm.slane %v511_v54, 2  ;;  %v509_v59 = vld [vmem:[%s4299_s22 + $0x8] sm:$0xff] }
 0x650   : > { %2675 = vmatpush.bf16.msra.mxu2 %v3903_v60  ;;  %2689 = vmatpush.bf16.msrb.mxu3 %v3911_v61 }
 0x653   : > { %2662 = vmatpush.bf16.msra.mxu1 %v3894_v62  ;;  %2704 = vmatpush.bf16.msrb.mxu0 %v3918_v63  ;;  %v510_v62 = vld [vmem:[%s4299_s22 + $0x10] sm:$0xff] }
 0x654   : > { %2676 = vmatpush.bf16.msra.mxu2 %v3902_v0  ;;  %2690 = vmatpush.bf16.msrb.mxu3 %v3910_v12 }
 0x655   : > { %3318 = vmatmul.msk.bf16.vlgmr.msrb.gmra.mxu1 %vm834_vm2, %v4506_v5  ;;  %3319 = vmatmul.msk.bf16.vlgmr.msrb.gmra.mxu2 %vm834_vm2, %v4506_v5 }
 0x656   : > { %3320 = vmatmul.msk.bf16.vlgmr.msra.gmra.mxu3 %vm834_vm2, %v4506_v5  ;;  %3321 = vmatmul.msk.bf16.vlgmr.msra.gmra.mxu0 %vm834_vm2, %v4506_v5  ;;  %v3915_v5 = vld [vmem:[%s4294_s16 + $0xc8] sm:$0xff] }
 0x657   : > { %2663 = vmatpush.bf16.msra.mxu1 %v3893_v1  ;;  %2705 = vmatpush.bf16.msrb.mxu0 %v3917_v14  ;;  %v1440_v1 = vperm.slane %v509_v59, 2  ;;  %v3967_v59 = vld [vmem:[%s4294_s16 + $0x268] sm:$0xff] }
 0x658   : > { %2677 = vmatpush.bf16.msra.mxu2 %v3901_v4  ;;  %2691 = vmatpush.bf16.msrb.mxu3 %v3909_v45  ;;  %v1441_v45 = vperm.slane %v510_v62, 2  ;;  %v3975_v62 = vld [vmem:[%s4294_s16 + $0x2a8] sm:$0xff] }
 0x65b   : > { %2664 = vmatpush.bf16.msra.mxu1 %v3892_v6  ;;  %2706 = vmatpush.bf16.msrb.mxu0 %v3916_v7 }
 0x65c   : > { %2678 = vmatpush.bf16.msra.mxu2 %v3900_v8  ;;  %2692 = vmatpush.bf16.msrb.mxu3 %v3908_v9 }
 0x65f   : > { %2665 = vmatpush.bf16.msra.mxu1 %v3891_v10  ;;  %2707 = vmatpush.bf16.msrb.mxu0 %v3915_v5  ;;  %v3961_v5 = vld [vmem:[%s4294_s16 + $0x238] sm:$0xff] }
 0x660   : > { %2679 = vmatpush.bf16.msra.mxu2 %v3899_v13  ;;  %2693 = vmatpush.bf16.msrb.mxu3 %v3907_v15 }
 0x663   : > { %2666 = vmatpush.bf16.msra.mxu1 %v3890_v22  ;;  %2708 = vmatpush.bf16.msrb.mxu0 %v3914_v31  ;;  %v3985_v22 = vld [vmem:[%s4294_s16 + $0x2f8] sm:$0xff] }
 0x664   : > { %2680 = vmatpush.bf16.msra.mxu2 %v3898_v18  ;;  %2694 = vmatpush.bf16.msrb.mxu3 %v3906_v19 }
 0x667   : > { %2715 = vmatpush.bf16.msrb.mxu1 %v3929_v16  ;;  %2757 = vmatpush.bf16.msra.mxu0 %v3953_v17 }
 0x668   : > { %2729 = vmatpush.bf16.msrb.mxu2 %v3937_v20  ;;  %2743 = vmatpush.bf16.msra.mxu3 %v3945_v21  ;;  %v512_v21 = vld [vmem:[%s4299_s22 + $0x20] sm:$0xff] }
 0x66b   : > { %2716 = vmatpush.bf16.msrb.mxu1 %v3928_v23  ;;  %2758 = vmatpush.bf16.msra.mxu0 %v3952_v24  ;;  %v3960_v24 = vld [vmem:[%s4294_s16 + $0x230] sm:$0xff] }
 0x66c   : > { %2730 = vmatpush.bf16.msrb.mxu2 %v3936_v25  ;;  %2744 = vmatpush.bf16.msra.mxu3 %v3944_v26 }
 0x66f   : > { %2717 = vmatpush.bf16.msrb.mxu1 %v3927_v27  ;;  %2759 = vmatpush.bf16.msra.mxu0 %v3951_v28  ;;  %v515_v27 = vld [vmem:[%s4299_s22 + $0x38] sm:$0xff] }
 0x670   : > { %2731 = vmatpush.bf16.msrb.mxu2 %v3935_v32  ;;  %2745 = vmatpush.bf16.msra.mxu3 %v3943_v33  ;;  %v3969_v33 = vld [vmem:[%s4294_s16 + $0x278] sm:$0xff] }
 0x673   : > { %2718 = vmatpush.bf16.msrb.mxu1 %v3926_v29  ;;  %2760 = vmatpush.bf16.msra.mxu0 %v3950_v30  ;;  %v3984_v29 = vld [vmem:[%s4294_s16 + $0x2f0] sm:$0xff] }
 0x674   : > { %2732 = vmatpush.bf16.msrb.mxu2 %v3934_v36  ;;  %2746 = vmatpush.bf16.msra.mxu3 %v3942_v37  ;;  %v3977_v36 = vld [vmem:[%s4294_s16 + $0x2b8] sm:$0xff] }
 0x677   : > { %2719 = vmatpush.bf16.msrb.mxu1 %v3925_v34  ;;  %2761 = vmatpush.bf16.msra.mxu0 %v3949_v35  ;;  %v1443_v35 = vperm.slane %v512_v21, 2 }
 0x678   : > { %2733 = vmatpush.bf16.msrb.mxu2 %v3933_v40  ;;  %2747 = vmatpush.bf16.msra.mxu3 %v3941_v41  ;;  %v3983_v40 = vld [vmem:[%s4294_s16 + $0x2e8] sm:$0xff] }
 0x679   : > { %v513_v41 = vld [vmem:[%s4299_s22 + $0x28] sm:$0xff] }
 0x67b   : > { %2720 = vmatpush.bf16.msrb.mxu1 %v3924_v38  ;;  %2762 = vmatpush.bf16.msra.mxu0 %v3948_v39  ;;  %v1446_v38 = vperm.slane %v515_v27, 2  ;;  %v3959_v39 = vld [vmem:[%s4294_s16 + $0x228] sm:$0xff]  ;;  %v3973_v27 = vld [vmem:[%s4294_s16 + $0x298] sm:$0xff] }
 0x67c   : > { %2734 = vmatpush.bf16.msrb.mxu2 %v3932_v44  ;;  %2748 = vmatpush.bf16.msra.mxu3 %v3940_v46  ;;  %v514_v46 = vld [vmem:[%s4299_s22 + $0x30] sm:$0xff] }
 0x67f   : > { %2721 = vmatpush.bf16.msrb.mxu1 %v3923_v42  ;;  %2763 = vmatpush.bf16.msra.mxu0 %v3947_v43  ;;  %v3968_v43 = vld [vmem:[%s4294_s16 + $0x270] sm:$0xff] }
 0x680   : > { %2735 = vmatpush.bf16.msrb.mxu2 %v3931_v49  ;;  %2749 = vmatpush.bf16.msra.mxu3 %v3939_v50 }
 0x683   : > { %2722 = vmatpush.bf16.msrb.mxu1 %v3922_v47  ;;  %2764 = vmatpush.bf16.msra.mxu0 %v3946_v48  ;;  %v3976_v48 = vld [vmem:[%s4294_s16 + $0x2b0] sm:$0xff] }
 0x684   : > { %2736 = vmatpush.bf16.msrb.mxu2 %v3930_v51  ;;  %2750 = vmatpush.bf16.msra.mxu3 %v3938_v52  ;;  %v3958_v51 = vld [vmem:[%s4294_s16 + $0x220] sm:$0xff]  ;;  %v1444_v52 = vperm.slane %v513_v41, 2 }
 0x6a2   : > { %v1627_v53 = vpop.f32.mrf.mxu1 }
 0x6a3   : > { %v1669_v55 = vpop.f32.mrf.mxu0  ;;  %v1628_v61 = vadd.f32 %v1627_v53, %v1439_v57 }
 0x6a4   : > { %v1670_v0 = vadd.f32 %v1669_v55, %v1442_v58  ;;  %v3982_v55 = vld [vmem:[%s4294_s16 + $0x2e0] sm:$0xff] }
 0x6a5   : > { %v1842_v7 = vmax.f32 %v1628_v61, 0.0 }
 0x6a6   : > { %v1845_v9 = vmax.f32 %v1670_v0, 0.0 }
 0x6a8   : > { %v1641_v60 = vpop.f32.mrf.mxu2 }
 0x6a9   : > { %v1655_v63 = vpop.f32.mrf.mxu3  ;;  %v1642_v13 = vadd.f32 %v1641_v60, %v1440_v1 }
 0x6aa   : > { %v1629_v12 = vpop.f32.mrf.mxu1  ;;  %v1656_v31 = vadd.f32 %v1655_v63, %v1441_v45 }
 0x6ab   : > { %v1630_v14 = vadd.f32 %v1629_v12, %v1439_v57  ;;  %v1671_v4 = vpop.f32.mrf.mxu0  ;;  %v1843_v25 = vmax.f32 %v1642_v13, 0.0  ;;  %v1445_v57 = vperm.slane %v514_v46, 2  ;;  %v3957_v12 = vld [vmem:[%s4294_s16 + $0x218] sm:$0xff] }
 0x6ac   : > { %v1672_v6 = vadd.f32 %v1671_v4, %v1442_v58  ;;  %v1844_v30 = vmax.f32 %v1656_v31, 0.0  ;;  %v3981_v4 = vld [vmem:[%s4294_s16 + $0x2d8] sm:$0xff]  ;;  %v3956_v31 = vld [vmem:[%s4294_s16 + $0x210] sm:$0xff] }
 0x6ad   : > { %v1858_v8 = vmax.f32 %v1630_v14, 0.0 }
 0x6ae   : > { %v1861_v10 = vmax.f32 %v1672_v6, 0.0 }
 0x6af   : > { %v1874_v15 = vpack.c.bf16 %v1858_v8, %v1842_v7  ;;  %v3966_v8 = vld [vmem:[%s4294_s16 + $0x260] sm:$0xff] }
 0x6b0   : > { %v1877_v16 = vpack.c.bf16 %v1861_v10, %v1845_v9  ;;  %v1643_v17 = vpop.f32.mrf.mxu2 }
 0x6b1   : > { %v1644_v18 = vadd.f32 %v1643_v17, %v1440_v1  ;;  %v1657_v19 = vpop.f32.mrf.mxu3  ;;  %2667 = vmatmul.bf16.vlgmr.msra.gmra.mxu1 %v1874_v15  ;;  %v516_v15 = vld [vmem:[%s4299_s22 + $0x40] sm:$0xff] }
 0x6b2   : > { %v1658_v20 = vadd.f32 %v1657_v19, %v1441_v45  ;;  %2709 = vmatmul.bf16.vlgmr.msrb.gmra.mxu0 %v1877_v16  ;;  %2771 = vmatpush.bf16.msra.mxu1 %v3961_v5  ;;  %v1683_v23 = vpop.f32.mrf.mxu1  ;;  %v3974_v5 = vld [vmem:[%s4294_s16 + $0x2a0] sm:$0xff] }
 0x6b3   : > { %v1859_v26 = vmax.f32 %v1644_v18, 0.0  ;;  %2813 = vmatpush.bf16.msrb.mxu0 %v3985_v22  ;;  %v1725_v28 = vpop.f32.mrf.mxu0  ;;  %v1684_v44 = vadd.f32 %v1683_v23, %v1443_v35  ;;  %v519_v18 = vld [vmem:[%s4299_s22 + $0x58] sm:$0xff] }
 0x6b4   : > { %v1860_v32 = vmax.f32 %v1658_v20, 0.0  ;;  %v1726_v49 = vadd.f32 %v1725_v28, %v1446_v38  ;;  %v3980_v20 = vld [vmem:[%s4294_s16 + $0x2d0] sm:$0xff] }
 0x6b5   : > { %v1875_v34 = vpack.c.bf16 %v1859_v26, %v1843_v25  ;;  %v1846_v60 = vmax.f32 %v1684_v44, 0.0  ;;  %v1447_v26 = vperm.slane %v516_v15, 2 }
 0x6b6   : > { %v1876_v37 = vpack.c.bf16 %v1860_v32, %v1844_v30  ;;  %2772 = vmatpush.bf16.msra.mxu1 %v3960_v24  ;;  %v1849_v63 = vmax.f32 %v1726_v49, 0.0  ;;  %v3965_v24 = vld [vmem:[%s4294_s16 + $0x258] sm:$0xff]  ;;  %v3955_v30 = vld [vmem:[%s4294_s16 + $0x208] sm:$0xff] }
 0x6b7   : > { %2814 = vmatpush.bf16.msrb.mxu0 %v3984_v29  ;;  %2681 = vmatmul.bf16.vlgmr.msra.gmra.mxu2 %v1875_v34  ;;  %v1450_v29 = vperm.slane %v519_v18, 2  ;;  %v3979_v32 = vld [vmem:[%s4294_s16 + $0x2c8] sm:$0xff]  ;;  %v4008_v18 = vld [vmem:[%s4294_s16 + $0x3b0] sm:$0xff] }
 0x6b8   : > { %2695 = vmatmul.bf16.vlgmr.msrb.gmra.mxu3 %v1876_v37  ;;  %2785 = vmatpush.bf16.msra.mxu2 %v3969_v33  ;;  %v1697_v42 = vpop.f32.mrf.mxu2  ;;  %v517_v33 = vld [vmem:[%s4299_s22 + $0x48] sm:$0xff]  ;;  %v518_v37 = vld [vmem:[%s4299_s22 + $0x50] sm:$0xff] }
 0x6b9   : > { %2799 = vmatpush.bf16.msrb.mxu3 %v3977_v36  ;;  %v1711_v47 = vpop.f32.mrf.mxu3  ;;  %v1698_v1 = vadd.f32 %v1697_v42, %v1444_v52  ;;  %v3954_v42 = vld [vmem:[%s4294_s16 + $0x200] sm:$0xff]  ;;  %v1449_v49 = vperm.slane %v518_v37, 2 }
 0x6ba   : > { %2773 = vmatpush.bf16.msra.mxu1 %v3959_v39  ;;  %v1685_v50 = vpop.f32.mrf.mxu1  ;;  %v1712_v45 = vadd.f32 %v1711_v47, %v1445_v57  ;;  %v3972_v39 = vld [vmem:[%s4294_s16 + $0x290] sm:$0xff]  ;;  %v3978_v47 = vld [vmem:[%s4294_s16 + $0x2c0] sm:$0xff] }
 0x6bb   : > { %2815 = vmatpush.bf16.msrb.mxu0 %v3983_v40  ;;  %v1686_v53 = vadd.f32 %v1685_v50, %v1443_v35  ;;  %v1727_v54 = vpop.f32.mrf.mxu0  ;;  %v1847_v16 = vmax.f32 %v1698_v1, 0.0  ;;  %v3964_v35 = vld [vmem:[%s4294_s16 + $0x250] sm:$0xff]  ;;  %v3962_v1 = vld [vmem:[%s4294_s16 + $0x240] sm:$0xff] }
 0x6bc   : > { %v1728_v58 = vadd.f32 %v1727_v54, %v1446_v38  ;;  %2786 = vmatpush.bf16.msra.mxu2 %v3968_v43  ;;  %v1848_v21 = vmax.f32 %v1712_v45, 0.0  ;;  %v1448_v43 = vperm.slane %v517_v33, 2  ;;  %v3970_v45 = vld [vmem:[%s4294_s16 + $0x280] sm:$0xff] }
 0x6bd   : > { %v1862_v61 = vmax.f32 %v1686_v53, 0.0  ;;  %2800 = vmatpush.bf16.msrb.mxu3 %v3976_v48  ;;  %v3993_v48 = vld [vmem:[%s4294_s16 + $0x338] sm:$0xff]  ;;  %v520_v33 = vld [vmem:[%s4299_s22 + $0x60] sm:$0xff] }
 0x6be   : > { %v1865_v0 = vmax.f32 %v1728_v58, 0.0  ;;  %2774 = vmatpush.bf16.msra.mxu1 %v3958_v51  ;;  %v4017_v51 = vld [vmem:[%s4294_s16 + $0x3f8] sm:$0xff] }
 0x6bf   : > { %v1878_v14 = vpack.c.bf16 %v1862_v61, %v1846_v60  ;;  %2816 = vmatpush.bf16.msrb.mxu0 %v3982_v55  ;;  %v3971_v55 = vld [vmem:[%s4294_s16 + $0x288] sm:$0xff]  ;;  %v3992_v61 = vld [vmem:[%s4294_s16 + $0x330] sm:$0xff] }
 0x6c0   : > { %v1881_v6 = vpack.c.bf16 %v1865_v0, %v1849_v63  ;;  %2787 = vmatpush.bf16.msra.mxu2 %v3967_v59  ;;  %v1699_v7 = vpop.f32.mrf.mxu2 }
 0x6c1   : > { %2801 = vmatpush.bf16.msrb.mxu3 %v3975_v62  ;;  %v1700_v9 = vadd.f32 %v1699_v7, %v1444_v52  ;;  %v1713_v10 = vpop.f32.mrf.mxu3  ;;  %2723 = vmatmul.bf16.vlgmr.msrb.gmra.mxu1 %v1878_v14  ;;  %v3963_v52 = vld [vmem:[%s4294_s16 + $0x248] sm:$0xff] }
 0x6c2   : > { %v1714_v13 = vadd.f32 %v1713_v10, %v1445_v57  ;;  %2765 = vmatmul.bf16.vlgmr.msra.gmra.mxu0 %v1881_v6  ;;  %2775 = vmatpush.bf16.msra.mxu1 %v3957_v12  ;;  %v1739_v22 = vpop.f32.mrf.mxu1  ;;  %v4016_v12 = vld [vmem:[%s4294_s16 + $0x3f0] sm:$0xff]  ;;  %v4001_v6 = vld [vmem:[%s4294_s16 + $0x378] sm:$0xff] }
 0x6c3   : > { %v1863_v17 = vmax.f32 %v1700_v9, 0.0  ;;  %2817 = vmatpush.bf16.msrb.mxu0 %v3981_v4  ;;  %v1781_v19 = vpop.f32.mrf.mxu0  ;;  %v1740_v36 = vadd.f32 %v1739_v22, %v1447_v26  ;;  %v4015_v22 = vld [vmem:[%s4294_s16 + $0x3e8] sm:$0xff] }
 0x6c4   : > { %v1864_v23 = vmax.f32 %v1714_v13, 0.0  ;;  %2788 = vmatpush.bf16.msra.mxu2 %v3966_v8  ;;  %v1782_v40 = vadd.f32 %v1781_v19, %v1450_v29  ;;  %v4009_v8 = vld [vmem:[%s4294_s16 + $0x3b8] sm:$0xff] }
 0x6c5   : > { %v1879_v25 = vpack.c.bf16 %v1863_v17, %v1847_v16  ;;  %2802 = vmatpush.bf16.msrb.mxu3 %v3974_v5  ;;  %v1850_v53 = vmax.f32 %v1740_v36, 0.0  ;;  %v3991_v5 = vld [vmem:[%s4294_s16 + $0x328] sm:$0xff]  ;;  %v4000_v16 = vld [vmem:[%s4294_s16 + $0x370] sm:$0xff] }
 0x6c6   : > { %v1880_v28 = vpack.c.bf16 %v1864_v23, %v1848_v21  ;;  %2776 = vmatpush.bf16.msra.mxu1 %v3956_v31  ;;  %v1853_v57 = vmax.f32 %v1782_v40, 0.0  ;;  %v4014_v23 = vld [vmem:[%s4294_s16 + $0x3e0] sm:$0xff]  ;;  %v4012_v36 = vld [vmem:[%s4294_s16 + $0x3d0] sm:$0xff] }
 0x6c7   : > { %2818 = vmatpush.bf16.msrb.mxu0 %v3980_v20  ;;  %2737 = vmatmul.bf16.vlgmr.msrb.gmra.mxu2 %v1879_v25  ;;  %v3990_v20 = vld [vmem:[%s4294_s16 + $0x320] sm:$0xff]  ;;  %v4007_v25 = vld [vmem:[%s4294_s16 + $0x3a8] sm:$0xff] }
 0x6c8   : > { %2751 = vmatmul.bf16.vlgmr.msra.gmra.mxu3 %v1880_v28  ;;  %2789 = vmatpush.bf16.msra.mxu2 %v3965_v24  ;;  %v1753_v34 = vpop.f32.mrf.mxu2  ;;  %v3999_v24 = vld [vmem:[%s4294_s16 + $0x368] sm:$0xff] }
 0x6c9   : > { %2803 = vmatpush.bf16.msrb.mxu3 %v3973_v27  ;;  %v1767_v38 = vpop.f32.mrf.mxu3  ;;  %v1754_v59 = vadd.f32 %v1753_v34, %v1448_v43  ;;  %v4013_v27 = vld [vmem:[%s4294_s16 + $0x3d8] sm:$0xff]  ;;  %v3988_v34 = vld [vmem:[%s4294_s16 + $0x310] sm:$0xff] }
 0x6ca   : > { %2777 = vmatpush.bf16.msra.mxu1 %v3955_v30  ;;  %v1741_v41 = vpop.f32.mrf.mxu1  ;;  %v1768_v62 = vadd.f32 %v1767_v38, %v1449_v49  ;;  %v3997_v38 = vld [vmem:[%s4294_s16 + $0x358] sm:$0xff] }
 0x6cb   : > { %2819 = vmatpush.bf16.msrb.mxu0 %v3979_v32  ;;  %v1742_v44 = vadd.f32 %v1741_v41, %v1447_v26  ;;  %v1783_v46 = vpop.f32.mrf.mxu0  ;;  %v1851_v9 = vmax.f32 %v1754_v59, 0.0  ;;  %v3989_v26 = vld [vmem:[%s4294_s16 + $0x318] sm:$0xff]  ;;  %v4006_v32 = vld [vmem:[%s4294_s16 + $0x3a0] sm:$0xff] }
 0x6cc   : > { %v1784_v50 = vadd.f32 %v1783_v46, %v1450_v29  ;;  %2790 = vmatpush.bf16.msra.mxu2 %v3964_v35  ;;  %v1852_v13 = vmax.f32 %v1768_v62, 0.0  ;;  %v3998_v29 = vld [vmem:[%s4294_s16 + $0x360] sm:$0xff]  ;;  %v523_v35 = vld [vmem:[%s4299_s22 + $0x78] sm:$0xff]  ;;  %v4011_v46 = vld [vmem:[%s4294_s16 + $0x3c8] sm:$0xff] }
 0x6cd   : > { %v1866_v54 = vmax.f32 %v1742_v44, 0.0  ;;  %2804 = vmatpush.bf16.msrb.mxu3 %v3972_v39  ;;  %v1451_v39 = vperm.slane %v520_v33, 2  ;;  %v4005_v41 = vld [vmem:[%s4294_s16 + $0x398] sm:$0xff] }
 0x6ce   : > { %v1869_v58 = vmax.f32 %v1784_v50, 0.0  ;;  %2778 = vmatpush.bf16.msra.mxu1 %v3954_v42  ;;  %v1454_v42 = vperm.slane %v523_v35, 2 }
 0x6cf   : > { %v1882_v60 = vpack.c.bf16 %v1866_v54, %v1850_v53  ;;  %2820 = vmatpush.bf16.msrb.mxu0 %v3978_v47  ;;  %v521_v47 = vld [vmem:[%s4299_s22 + $0x68] sm:$0xff] }
 0x6d0   : > { %v1885_v63 = vpack.c.bf16 %v1869_v58, %v1853_v57  ;;  %2791 = vmatpush.bf16.msra.mxu2 %v3963_v52  ;;  %v1755_v0 = vpop.f32.mrf.mxu2  ;;  %v4004_v52 = vld [vmem:[%s4294_s16 + $0x390] sm:$0xff]  ;;  %v1452_v57 = vperm.slane %v521_v47, 2 }
 0x6d1   : > { %2805 = vmatpush.bf16.msrb.mxu3 %v3971_v55  ;;  %v1756_v14 = vadd.f32 %v1755_v0, %v1448_v43  ;;  %v1769_v4 = vpop.f32.mrf.mxu3  ;;  %2779 = vmatmul.bf16.vlgmr.msra.gmra.mxu1 %v1882_v60  ;;  %v3987_v43 = vld [vmem:[%s4294_s16 + $0x308] sm:$0xff]  ;;  %v3986_v55 = vld [vmem:[%s4294_s16 + $0x300] sm:$0xff] }
 0x6d2   : > { %2827 = vmatpush.bf16.msrb.mxu1 %v3993_v48  ;;  %v1770_v7 = vadd.f32 %v1769_v4, %v1449_v49  ;;  %2821 = vmatmul.bf16.vlgmr.msrb.gmra.mxu0 %v1885_v63  ;;  %v1795_v19 = vpop.f32.mrf.mxu1  ;;  %v3996_v49 = vld [vmem:[%s4294_s16 + $0x350] sm:$0xff]  ;;  %v4010_v60 = vld [vmem:[%s4294_s16 + $0x3c0] sm:$0xff]  ;;  %v3995_v63 = vld [vmem:[%s4294_s16 + $0x348] sm:$0xff] }
 0x6d3   : > { %2869 = vmatpush.bf16.msra.mxu0 %v4017_v51  ;;  %v1867_v10 = vmax.f32 %v1756_v14, 0.0  ;;  %v1837_v21 = vpop.f32.mrf.mxu0  ;;  %v1796_v50 = vadd.f32 %v1795_v19, %v1451_v39  ;;  %v522_v51 = vld [vmem:[%s4299_s22 + $0x70] sm:$0xff] }
 0x6d4   : > { %v1868_v15 = vmax.f32 %v1770_v7, 0.0  ;;  %2792 = vmatpush.bf16.msra.mxu2 %v3962_v1  ;;  %v1838_v53 = vadd.f32 %v1837_v21, %v1454_v42  ;;  %v4003_v1 = vld [vmem:[%s4294_s16 + $0x388] sm:$0xff] }
 0x6d5   : > { %v1883_v31 = vpack.c.bf16 %v1867_v10, %v1851_v9  ;;  %2806 = vmatpush.bf16.msrb.mxu3 %v3970_v45  ;;  %v1854_v0 = vmax.f32 %v1796_v50, 0.0  ;;  %v3994_v9 = vld [vmem:[%s4294_s16 + $0x340] sm:$0xff] }
 0x6d6   : > { %2828 = vmatpush.bf16.msrb.mxu1 %v3992_v61  ;;  %v1884_v17 = vpack.c.bf16 %v1868_v15, %v1852_v13  ;;  %v1453_v61 = vperm.slane %v522_v51, 2  ;;  %v1857_v14 = vmax.f32 %v1838_v53, 0.0 }
 0x6d7   : > { %2870 = vmatpush.bf16.msra.mxu0 %v4016_v12  ;;  %2793 = vmatmul.bf16.vlgmr.msra.gmra.mxu2 %v1883_v31 }
 0x6d8   : > { %2841 = vmatpush.bf16.msrb.mxu2 %v4001_v6  ;;  %2807 = vmatmul.bf16.vlgmr.msrb.gmra.mxu3 %v1884_v17  ;;  %v1809_v28 = vpop.f32.mrf.mxu2 }
 0x6d9   : > { %2855 = vmatpush.bf16.msra.mxu3 %v4009_v8  ;;  %v1823_v30 = vpop.f32.mrf.mxu3  ;;  %v1810_v45 = vadd.f32 %v1809_v28, %v1452_v57 }
 0x6da   : > { %2829 = vmatpush.bf16.msrb.mxu1 %v3991_v5  ;;  %v1797_v37 = vpop.f32.mrf.mxu1  ;;  %v1824_v7 = vadd.f32 %v1823_v30, %v1453_v61  ;;  %v4002_v5 = vld [vmem:[%s4294_s16 + $0x380] sm:$0xff] }
 0x6db   : > { %2871 = vmatpush.bf16.msra.mxu0 %v4015_v22  ;;  %v1839_v40 = vpop.f32.mrf.mxu0  ;;  %v1798_v44 = vadd.f32 %v1797_v37, %v1451_v39  ;;  %v1855_v15 = vmax.f32 %v1810_v45, 0.0 }
 0x6dc   : > { %2842 = vmatpush.bf16.msrb.mxu2 %v4000_v16  ;;  %v1840_v48 = vadd.f32 %v1839_v40, %v1454_v42  ;;  %v1856_v22 = vmax.f32 %v1824_v7, 0.0 }
 0x6dd   : > { %2856 = vmatpush.bf16.msra.mxu3 %v4008_v18  ;;  %v1870_v58 = vmax.f32 %v1798_v44, 0.0 }
 0x6de   : > { %2830 = vmatpush.bf16.msrb.mxu1 %v3990_v20  ;;  %v1873_v62 = vmax.f32 %v1840_v48, 0.0 }
 0x6df   : > { %2872 = vmatpush.bf16.msra.mxu0 %v4014_v23  ;;  %v1886_v6 = vpack.c.bf16 %v1870_v58, %v1854_v0 }
 0x6e0   : > { %2843 = vmatpush.bf16.msrb.mxu2 %v3999_v24  ;;  %v1811_v54 = vpop.f32.mrf.mxu2  ;;  %v1889_v8 = vpack.c.bf16 %v1873_v62, %v1857_v14 }
 0x6e1   : > { %2857 = vmatpush.bf16.msra.mxu3 %v4007_v25  ;;  %v1825_v59 = vpop.f32.mrf.mxu3  ;;  %v1812_v12 = vadd.f32 %v1811_v54, %v1452_v57 }
 0x6e2   : > { %2831 = vmatpush.bf16.msrb.mxu1 %v3989_v26  ;;  %v1826_v4 = vadd.f32 %v1825_v59, %v1453_v61  ;;  %v1890_v26 = vperm.slane %v4630_v56, 3 }
 0x6e3   : > { %2873 = vmatpush.bf16.msra.mxu0 %v4013_v27  ;;  %v1871_v10 = vmax.f32 %v1812_v12, 0.0 }
 0x6e4   : > { %2844 = vmatpush.bf16.msrb.mxu2 %v3998_v29  ;;  %v1872_v13 = vmax.f32 %v1826_v4, 0.0 }
 0x6e5   : > { %2858 = vmatpush.bf16.msra.mxu3 %v4006_v32  ;;  %v1887_v31 = vpack.c.bf16 %v1871_v10, %v1855_v15 }
 0x6e6   : > { %2832 = vmatpush.bf16.msrb.mxu1 %v3988_v34  ;;  %v1888_v16 = vpack.c.bf16 %v1872_v13, %v1856_v22 }
 0x6e7   : > { %2874 = vmatpush.bf16.msra.mxu0 %v4012_v36 }
 0x6e8   : > { %2845 = vmatpush.bf16.msrb.mxu2 %v3997_v38 }
 0x6e9   : > { %2859 = vmatpush.bf16.msra.mxu3 %v4005_v41 }
 0x6ea   : > { %2833 = vmatpush.bf16.msrb.mxu1 %v3987_v43 }
 0x6eb   : > { %2875 = vmatpush.bf16.msra.mxu0 %v4011_v46 }
 0x6ec   : > { %2846 = vmatpush.bf16.msrb.mxu2 %v3996_v49 }
 0x6ed   : > { %2860 = vmatpush.bf16.msra.mxu3 %v4004_v52 }
 0x6ee   : > { %2834 = vmatpush.bf16.msrb.mxu1 %v3986_v55 }
 0x6ef   : > { %2876 = vmatpush.bf16.msra.mxu0 %v4010_v60 }
 0x6f0   : > { %2847 = vmatpush.bf16.msrb.mxu2 %v3995_v63 }
 0x6f1   : > { %2861 = vmatpush.bf16.msra.mxu3 %v4003_v1  ;;  %2835 = vmatmul.bf16.vlgmr.msrb.gmra.mxu1 %v1886_v6 }
 0x6f2   : > { %2877 = vmatmul.bf16.vlgmr.msra.gmra.mxu0 %v1889_v8 }
 0x6f4   : > { %2848 = vmatpush.bf16.msrb.mxu2 %v3994_v9 }
 0x6f5   : > { %2862 = vmatpush.bf16.msra.mxu3 %v4002_v5 }
 0x6f7   : > { %2849 = vmatmul.bf16.vlgmr.msrb.gmra.mxu2 %v1887_v31 }
 0x6f8   : > { %2863 = vmatmul.bf16.vlgmr.msra.gmra.mxu3 %v1888_v16 }
 0x72e   : > { %v2668_v17 = vpop.f32.mrf.mxu1 }
 0x72f   : > { %v2710_v20 = vpop.f32.mrf.mxu0  ;;  %v2669_v28 = vadd.f32 %v2668_v17, %v1890_v26 }
 0x736   : > { %v2670_v21 = vpop.f32.mrf.mxu1 }
 0x737   : > { %v2712_v25 = vpop.f32.mrf.mxu0  ;;  %v2671_v36 = vadd.f32 %v2670_v21, %v1890_v26 }
 0x73a   : > { %v2682_v18 = vpop.f32.mrf.mxu2 }
 0x73b   : > { %v2696_v19 = vpop.f32.mrf.mxu3  ;;  %v2683_v29 = vadd.f32 %v2682_v18, %v2669_v28 }
 0x73d   : > { %v2697_v34 = vadd.f32 %v2696_v19, %v2683_v29 }
 0x73e   : > { %v2724_v27 = vpop.f32.mrf.mxu1 }
 0x73f   : > { %v2766_v33 = vpop.f32.mrf.mxu0  ;;  %v2711_v37 = vadd.f32 %v2710_v20, %v2697_v34 }
 0x741   : > { %v2725_v40 = vadd.f32 %v2724_v27, %v2711_v37 }
 0x742   : > { %v2684_v23 = vpop.f32.mrf.mxu2 }
 0x743   : > { %v2698_v24 = vpop.f32.mrf.mxu3  ;;  %v2685_v38 = vadd.f32 %v2684_v23, %v2671_v36 }
 0x745   : > { %v2699_v41 = vadd.f32 %v2698_v24, %v2685_v38 }
 0x746   : > { %v2726_v35 = vpop.f32.mrf.mxu1 }
 0x747   : > { %v2768_v43 = vpop.f32.mrf.mxu0  ;;  %v2713_v47 = vadd.f32 %v2712_v25, %v2699_v41 }
 0x749   : > { %v2727_v49 = vadd.f32 %v2726_v35, %v2713_v47 }
 0x74a   : > { %v2738_v30 = vpop.f32.mrf.mxu2 }
 0x74b   : > { %v2752_v32 = vpop.f32.mrf.mxu3  ;;  %v2739_v44 = vadd.f32 %v2738_v30, %v2725_v40 }
 0x74d   : > { %v2753_v48 = vadd.f32 %v2752_v32, %v2739_v44 }
 0x74e   : > { %v2780_v46 = vpop.f32.mrf.mxu1 }
 0x74f   : > { %v2767_v51 = vadd.f32 %v2766_v33, %v2753_v48  ;;  %v2822_v54 = vpop.f32.mrf.mxu0 }
 0x751   : > { %v2781_v57 = vadd.f32 %v2780_v46, %v2767_v51  ;;  %v2929_v51 = vperm.slane %v4630_v56, 6 }
 0x752   : > { %v2740_v39 = vpop.f32.mrf.mxu2 }
 0x753   : > { %v2754_v42 = vpop.f32.mrf.mxu3  ;;  %v2741_v52 = vadd.f32 %v2740_v39, %v2727_v49 }
 0x755   : > { %v2755_v58 = vadd.f32 %v2754_v42, %v2741_v52 }
 0x756   : > { %v2782_v55 = vpop.f32.mrf.mxu1 }
 0x757   : > { %v2769_v60 = vadd.f32 %v2768_v43, %v2755_v58  ;;  %v2824_v0 = vpop.f32.mrf.mxu0 }
 0x759   : > { %v2783_v1 = vadd.f32 %v2782_v55, %v2769_v60 }
 0x75a   : > { %v2794_v50 = vpop.f32.mrf.mxu2 }
 0x75b   : > { %v2808_v53 = vpop.f32.mrf.mxu3  ;;  %v2795_v59 = vadd.f32 %v2794_v50, %v2781_v57 }
 0x75d   : > { %v2809_v62 = vadd.f32 %v2808_v53, %v2795_v59 }
 0x75f   : > { %v2823_v4 = vadd.f32 %v2822_v54, %v2809_v62  ;;  %v2932_v54 = vperm.slane %v4630_v56, 7 }
 0x762   : > { %v2796_v61 = vpop.f32.mrf.mxu2 }
 0x763   : > { %v2810_v63 = vpop.f32.mrf.mxu3  ;;  %v2797_v14 = vadd.f32 %v2796_v61, %v2783_v1 }
 0x765   : > { %v2811_v7 = vadd.f32 %v2810_v63, %v2797_v14 }
 0x767   : > { %v2825_v15 = vadd.f32 %v2824_v0, %v2811_v7 }
 0x76e   : > { %v2836_v12 = vpop.f32.mrf.mxu1 }
 0x76f   : > { %v2837_v45 = vadd.f32 %v2836_v12, %v2823_v4  ;;  %v2878_v10 = vpop.f32.mrf.mxu0 }
 0x776   : > { %v2838_v13 = vpop.f32.mrf.mxu1 }
 0x777   : > { %v2839_v31 = vadd.f32 %v2838_v13, %v2825_v15  ;;  %v2880_v23 = vpop.f32.mrf.mxu0 }
 0x77a   : > { %v2850_v6 = vpop.f32.mrf.mxu2 }
 0x77b   : > { %v2851_v8 = vadd.f32 %v2850_v6, %v2837_v45  ;;  %v2864_v9 = vpop.f32.mrf.mxu3 }
 0x77d   : > { %v2865_v5 = vadd.f32 %v2864_v9, %v2851_v8 }
 0x77f   : > { %v2879_v22 = vadd.f32 %v2878_v10, %v2865_v5 }
 0x781   : > { %v2883_v16 = vadd.f32 %v2879_v22, %v4497_v2 }
 0x782   : > { %v2852_v17 = vpop.f32.mrf.mxu2 }
 0x783   : > { %v2853_v18 = vadd.f32 %v2852_v17, %v2839_v31  ;;  %v2885_v19 = vsel %vm834_vm2, %v2883_v16, 0.0  ;;  %v2866_v20 = vpop.f32.mrf.mxu3 }
 0x784   : > { %2886 = vadd.xlane.f32.xlu2 %v2885_v19 }
 0x785   : > { %v2867_v21 = vadd.f32 %v2866_v20, %v2853_v18 }
 0x787   : > { %v2881_v24 = vadd.f32 %v2880_v23, %v2867_v21 }
 0x789   : > { %v2884_v25 = vadd.f32 %v2881_v24, %v4499_v3 }
 0x78b   : > { %v2888_v26 = vsel %vm834_vm2, %v2884_v25, 0.0 }
 0x78c   : > { %2889 = vadd.xlane.f32.xlu2 %v2888_v26 }
 0x7f7   : > { %v2887_v27 = vpop.xlane.xlu2 %2886 }
 0x7f8   : > { %v2891_v28 = vmul.f32 %v2887_v27, %v4435_v11 }
 0x7fa   : > { %v2893_v29 = vsub.f32 %v2883_v16, %v2891_v28 }
 0x7fc   : > { %v2895_v30 = vmul.f32 %v2893_v29, %v2893_v29 }
 0x7fe   : > { %v2897_v2 = vsel %vm834_vm2, %v2895_v30, 0.0 }
 0x7ff   : > { %2898 = vadd.xlane.f32.xlu2 %v2897_v2  ;;  %v2890_v32 = vpop.xlane.xlu2 %2889 }
 0x800   : > { %v2892_v33 = vmul.f32 %v2890_v32, %v4435_v11 }
 0x802   : > { %v2894_v34 = vsub.f32 %v2884_v25, %v2892_v33 }
 0x804   : > { %v2896_v35 = vmul.f32 %v2894_v34, %v2894_v34 }
 0x806   : > { %v2900_v36 = vsel %vm834_vm2, %v2896_v35, 0.0 }
 0x807   : > { %2901 = vadd.xlane.f32.xlu1 %v2900_v36 }
 0x872   : > { %v2899_v3 = vpop.xlane.xlu2 %2898 }
 0x873   : > { %v2903_v37 = vmul.f32 %v2899_v3, %v4435_v11 }
 0x875   : > { %v2905_v38 = vadd.f32 1e-05, %v2903_v37 }
 0x877   : > { %4120 = vrsqrt.f32 %v2905_v38  ;;  %vm2913_vm15 = vweird.f32 %v2905_v38 }
 0x87a   : > { %v2902_v39 = vpop.xlane.xlu1 %2901 }
 0x87b   : > { %v2904_v40 = vmul.f32 %v2902_v39, %v4435_v11 }
 0x87d   : > { %v4121_v41 = vpop.eup %4120  ;;  %v2906_v42 = vadd.f32 1e-05, %v2904_v40 }
 0x87e   : > { %v2908_v43 = vmul.f32 %v4121_v41, %v2905_v38  ;;  %vm2914_vm14 = vweird.f32 %v4121_v41 }
 0x87f   : > { %4122 = vrsqrt.f32 %v2906_v42  ;;  %vm2915_vm0 = vmor %vm2913_vm15, %vm2914_vm14  ;;  %vm2923_vm3 = vweird.f32 %v2906_v42 }
 0x880   : > { %v2909_v44 = vmul.f32 %v4121_v41, %v2908_v43 }
 0x882   : > { %v2910_v46 = vmul.f32 0.5, %v2909_v44 }
 0x884   : > { %v2911_v47 = vsub.f32 1.5, %v2910_v46 }
 0x885   : > { %v4123_v48 = vpop.eup %4122 }
 0x886   : > { %v2912_v49 = vmul.f32 %v4121_v41, %v2911_v47  ;;  %v2918_v50 = vmul.f32 %v4123_v48, %v2906_v42  ;;  %vm2924_vm1 = vweird.f32 %v4123_v48 }
 0x887   : > { %vm2925_vm4 = vmor %vm2923_vm3, %vm2924_vm1 }
 0x888   : > { %v2916_v52 = vsel %vm2915_vm0, %v4121_v41, %v2912_v49  ;;  %v2919_v53 = vmul.f32 %v4123_v48, %v2918_v50 }
 0x889   : > { %v2927_v11 = vmul.f32 %v2916_v52, %v2893_v29 }
 0x88a   : > { %v2920_v55 = vmul.f32 0.5, %v2919_v53 }
 0x88b   : > { %v2930_v57 = vmul.f32 %v2929_v51, %v2927_v11 }
 0x88c   : > { %v2921_v58 = vsub.f32 1.5, %v2920_v55 }
 0x88d   : > { %v2933_v59 = vadd.f32 %v2932_v54, %v2930_v57 }
 0x88e   : > { %v2922_v60 = vmul.f32 %v4123_v48, %v2921_v58 }
 0x88f   : > { %2935 = vst.msk [vmem:[#allocation2] sm:$0xff] %vm834_vm2, %v2933_v59 }
 0x890   : > { %v2926_v61 = vsel %vm2925_vm4, %v4123_v48, %v2922_v60 }
 0x891   : > { %v2928_v62 = vmul.f32 %v2926_v61, %v2894_v34 }
 0x893   : > { %v2931_v63 = vmul.f32 %v2929_v51, %v2928_v62  ;;  %2940 = sbr.rel (%p3834_p6) target bundleno = 2349 (0x92d), region = 68 }
 0x895   : > { %v2934_v0 = vadd.f32 %v2932_v54, %v2931_v63 }
 0x897   : > { %2936 = vst.msk [vmem:[#allocation2 + $0x8] sm:$0xff] %vm834_vm2, %v2934_v0 }
 0x898   : > { %v4019_v56 = vld [vmem:[%s4759_s8 + $0x8] sm:$0xff]  ;;  %v2941_v12 = vpack.c.bf16 %v2933_v59, %v2933_v59  ;;  %v2942_v1 = vpack.c.bf16 %v2934_v0, %v2934_v0  ;;  %v4018_v14 = vld [vmem:[%s4759_s8] sm:$0xff]  ;;  %vm2957_vm5 = vcmask 1041409   ;;  %v2988_v10 = vlaneseq }
 0x899   : > { %2981 = vmatpush.bf16.msra.mxu0 %v4019_v56  ;;  %v4125_v13 = vld [vmem:[%s4760_s9] ss:$0 sm:$0xff]  ;;  %vm2997_vm9 = vcmask 254976  }
 0x89a   : > { %v2953_v4 = vunpack.c.l.b16 %v2941_v12  ;;  %v2954_v45 = vunpack.c.l.b16 %v2942_v1  ;;  %v2989_v5 = vand.u32 127, %v2988_v10 }
 0x89c   : > { %v2955_v6 = vrot.slane %v2953_v4, 7  ;;  %v2956_v7 = vrot.slane %v2954_v45, 6  ;;  %vm2990_vm6 = vcmp.ge.s32.totalorder %v2989_v5, 16  ;;  %vm2991_vm7 = vcmp.lt.s32.totalorder %v2989_v5, 24 }
 0x89d   : > { %2982 = vmatpush.bf16.msra.mxu0 %v4018_v14  ;;  %vm2992_vm8 = vmand %vm2990_vm6, %vm2991_vm7 }
 0x89e   : > { %v2958_v8 = vsel %vm2957_vm5, %v2956_v7, %v2955_v6 }
 0x89f   : > { %v2959_v9 = vpack.c.b16 %v2958_v8, %v2958_v8 }
 0x8a1   : > { %3843 = vmatmul.msk.bf16.vlgmr.msra.gmra.mxu0 %vm834_vm2, %v2959_v9 }
 0x91e   : > { %v2984_v15 = vpop.f32.mrf.mxu0 }
 0x91f   : > { %v2985_v22 = vadd.f32 %v4125_v13, %v2984_v15 }
 0x921   : > { %v2993_v31 = vsel %vm2992_vm8, %v2985_v22, 0.0 }
 0x922   : > { %v2994_v16 = vmul.f32 1.442695, %v2993_v31 }
 0x924   : > { %4126 = vpow2.f32 %v2994_v16 }
 0x926   : > { %v2986_v17 = vpop.f32.mrf.mxu0 }
 0x92a   : > { %v4127_v18 = vpop.eup %4126 }
 0x92b   : > { %v2996_v19 = vsel %vm2992_vm8, %v4127_v18, %v2985_v22 }
 0x92c   : > { %2998 = vst.msk [vmem:[#allocation3] sm:$0x3] %vm2997_vm9, %v2996_v19 }
 0x92d PF: > { %s4765_s23 = sadd.s32 4294967295, %s4182_s15   ;;  %s3009_s12 = sshll.u32 %s4761_s10, 4  ;;  %s3010_s12 = int_to_ptr.hbm [resolvable:$true] %s3009_s12 }
 0x92e   : > { %p4024_p7 = scmp.eq.s32.totalorder %s4765_s23, 1  ;;  %s4199_s21 = smov [#allocation3]  }
 0x92f   : > { %s3007_s19 = sshll.u32 %s4199_s21, 4  ;;  %s3008_s19 = int_to_ptr.vmem [resolvable:$true] %s3007_s19 }
 0x930   : > { %4021 = dma.vmem_to_hbm [thread:$0]  (%p4024_p7), %s3008_s19, 32, %s3010_s12, [#allocation4]  }
 0x931   : > { %4169 = dma.done.wait (%p4024_p7), [#allocation4], 32  }
 0x932   : > { %4171 = vsyncadd (%p4024_p7), [#allocation4], 4294967264 }
 0x933 PF: > { %s21_s15 = sadd.s32 1, %s4182_s15   ;;  %s4766_s13 = sld [smem:[#allocation6_spill]] }
 0x934   : > { %p18_p8 = scmp.ge.s32.totalorder %s21_s15, 4   ;;  %s4767_s14 = sld [smem:[#allocation7_spill]] }
 0x936   :  { %20 = sbr.rel (!%p18_p8) target bundleno = 2 (0x2), region = 111 }
 0x93b   :  { %3023 = vsyncpa [#allocation4], 1 }
 0x93c   :  { %3025 = vsyncpa [#allocation4 + $0x1], 1 }

</bundles_post_ra>
